<compile_context>
chip_gen: v5e
topology: v5e:2x2
jax: 0.10.0
libtpu: 0.0.40
codegen_flags: <defaults>
</compile_context>

<pallas_src>
import re
import numpy as np
import jax
import jax.numpy as jnp
from jax import lax
from jax.experimental import pallas as pl
from jax.experimental.pallas import tpu as pltpu

H, W = 32, 128
HW = H * W                   # 4096 = fc_weight's first dim
NUM_TEMPLATES = 66           # repeat_interleave factor / template count
NUM_SLOTS = 8                # fc_weight's second dim (character slots)
NT_PAD = 72                  # 66 templates padded to a multiple of 8 sublanes


def _match_kernel(x_ref, t_ref, w_ref, o_ref, red_ref):
    # x_ref:   (tb, hs_pad, 128)   plates, compute dtype (f32 or bf16)
    # t_ref:   (hs_pad, 66, 128)   templates, row-major in h, grid-invariant
    # w_ref:   (128, 8)            block-diagonal 0/1 column weight
    # o_ref:   (tb, 72, 8)  f32    scores (rows 66..71 are padding, sliced off)
    # red_ref: (tb, 72, 128) f32   per-plate row-sum scratch
    tb, hs_pad, _ = x_ref.shape
    nt = t_ref.shape[1]                       # 66
    nt_pad = red_ref.shape[1]                 # 72

    # Zero the padded template rows of the scratch (static-offset masked store);
    # they only feed output rows that the wrapper discards.
    red_ref[:, pl.ds(nt, nt_pad - nt), :] = jnp.zeros(
        (tb, nt_pad - nt, W), jnp.float32)

    def plate_body(b, carry):
        acc = jnp.zeros((nt, W), jnp.float32)
        for h in range(hs_pad):               # static unroll over active rows
            xrow = x_ref[b, pl.ds(h, 1), :]                   # (1, 128)
            diff = jnp.abs(xrow - t_ref[h])                   # (66, 128)  VPU
            acc = acc + diff.astype(jnp.float32)              # f32 accumulate
        red_ref[b, pl.ds(0, nt), :] = acc
        return carry

    lax.fori_loop(0, tb, plate_body, 0)

    # One batched MXU pass for all plates of this grid step.
    reduced = red_ref[...].reshape(tb * nt_pad, W)            # (tb*72, 128) f32
    w = w_ref[...]
    scores = jnp.dot(reduced.astype(w.dtype), w,
                     preferred_element_type=jnp.float32)       # (tb*72, 8)
    o_ref[...] = scores.reshape(tb, nt_pad, NUM_SLOTS)


def _factorize_fc_weight(fc_np):
    """fc[h*W + w, s] == gate[h] * w128[w, s]; returns (h_lo, h_hi, w128)."""
    fc3 = fc_np.reshape(H, W, NUM_SLOTS)
    row_gate = np.abs(fc3).sum(axis=(1, 2)) > 0
    nz = np.nonzero(row_gate)[0]
    h_lo, h_hi = int(nz[0]), int(nz[-1]) + 1
    assert np.array_equal(nz, np.arange(h_lo, h_hi)), "active rows not contiguous"
    w128 = fc3[h_lo].astype(np.float32)                        # (128, 8)
    recon = np.where(row_gate[:, None, None], w128[None], 0.0)
    assert np.array_equal(recon.astype(fc3.dtype), fc3), "fc_weight is not separable"
    return h_lo, h_hi, w128


def _tpu_traits():
    """(dual_tensorcore, native_bf16_vpu) for the default device; safe fallback."""
    try:
        kind = jax.devices()[0].device_kind.lower()
        m = re.search(r"(\d+)", kind)
        gen = int(m.group(1)) if m else 0
    except Exception:
        gen = 0
    return gen >= 7, gen >= 6


def make_match_head(plate_template, fc_weight, *, block_batch=None, compute_dtype=None):
    """One-time init: factorize fc_weight, preprocess templates. Returns jit-able forward."""
    assert plate_template.shape == (NUM_TEMPLATES, H, W)
    assert fc_weight.shape == (HW, NUM_SLOTS)

    h_lo, h_hi, w128_np = _factorize_fc_weight(np.asarray(fc_weight, dtype=np.float32))
    hs = h_hi - h_lo                                           # 21 active rows
    hs_pad = ((hs + 7) // 8) * 8                               # -> 24 (full tiles)

    dual_tc, native_bf16 = _tpu_traits()
    if compute_dtype is None:
        compute_dtype = jnp.bfloat16 if native_bf16 else jnp.float32
    if block_batch is None:
        block_batch = 64 if dual_tc else 32

    t = np.asarray(plate_template, dtype=np.float32)[:, h_lo:h_hi, :]  # (66, 21, 128)
    t = np.transpose(t, (1, 0, 2))                                      # (21, 66, 128)
    t = np.pad(t, ((0, hs_pad - hs), (0, 0), (0, 0)))                   # (24, 66, 128)
    t_dev = jnp.asarray(t, dtype=compute_dtype)
    w_dev = jnp.asarray(w128_np, dtype=compute_dtype)                   # (128, 8)

    def forward(sr_plate):
        B, C, Hh, Ww = sr_plate.shape
        assert C == 1 and (Hh, Ww) == (H, W)

        x = sr_plate.reshape(B, H, W)[:, h_lo:h_hi, :].astype(compute_dtype)
        x = jnp.pad(x, ((0, 0), (0, hs_pad - hs), (0, 0)))              # (B, 24, 128)

        # Generation-aware batch tiling.
        if dual_tc and B >= 2:
            steps = 2 * pl.cdiv(B, 2 * block_batch)   # even #steps: balance 2 TCs
        else:
            steps = pl.cdiv(B, block_batch)           # single TC: fewest steps
        tb = pl.cdiv(B, steps)
        grid = pl.cdiv(B, tb)
        bp = grid * tb
        if bp != B:
            x = jnp.pad(x, ((0, bp - B), (0, 0), (0, 0)))

        out = pl.pallas_call(
            _match_kernel,
            out_shape=jax.ShapeDtypeStruct((bp, NT_PAD, NUM_SLOTS), jnp.float32),
            grid=(grid,),
            in_specs=[
                pl.BlockSpec((tb, hs_pad, W), lambda g: (g, 0, 0)),
                # templates + weight are grid-invariant: DMA'd once, reused each step
                pl.BlockSpec((hs_pad, NUM_TEMPLATES, W), lambda g: (0, 0, 0)),
                pl.BlockSpec((W, NUM_SLOTS), lambda g: (0, 0)),
            ],
            out_specs=pl.BlockSpec((tb, NT_PAD, NUM_SLOTS), lambda g: (g, 0, 0)),
            scratch_shapes=[pltpu.VMEM((tb, NT_PAD, W), jnp.float32)],
            compiler_params=pltpu.CompilerParams(dimension_semantics=("parallel",)),
        )(x, t_dev, w_dev)
        return out[:B, :NUM_TEMPLATES, :]

    return forward


def _build_fc_weight():
    # Exactly the deterministic construction from MatchHead.__init__
    fc = np.zeros((HW, NUM_SLOTS), dtype=np.float32)
    for i in range(NUM_SLOTS):
        for j in range(5, 26):
            fc[i * 16 + j * 128: i * 16 + j * 128 + 16, i] = 1.0
    return jnp.asarray(fc)


if __name__ == "__main__":
    key = jax.random.PRNGKey(0)
    k_plate, k_tmpl = jax.random.split(key)

    B = 2
    sr_plate = jax.random.uniform(k_plate, (B, 1, H, W), dtype=jnp.float32)
    # TODO(synk): plate_template comes from torch.load in the original module;
    # synthesized deterministically here instead of loading a checkpoint.
    plate_template = jax.random.uniform(k_tmpl, (NUM_TEMPLATES, H, W), dtype=jnp.float32)
    fc_weight = _build_fc_weight()

    match_head = jax.jit(make_match_head(plate_template, fc_weight))
    out = jax.block_until_ready(match_head(sr_plate))
    assert out.shape == (B, NUM_TEMPLATES, NUM_SLOTS)

    # Exact (float64, host) reference of the PyTorch forward.
    x64 = np.asarray(sr_plate, dtype=np.float64)                   # (B,1,32,128)
    t64 = np.asarray(plate_template, dtype=np.float64)             # (66,32,128)
    ref = np.abs(x64 - t64[None]).reshape(B, NUM_TEMPLATES, HW) @ np.asarray(
        fc_weight, dtype=np.float64)

    # Tolerance covers the bf16 abs-diff path used on v6e/v7x (f32 accumulation
    # keeps the error ~0.05-0.3 absolute on outputs of magnitude ~1e2); real
    # layout / masking bugs shift results by O(1)-O(100) and are still caught.
    np.testing.assert_allclose(np.asarray(out), ref, rtol=5e-3, atol=0.3)
    print("KERNEL_OK")
</pallas_src>

<mosaic_0001>
module attributes {stable_mosaic.version = 11 : i64} {
  func.func @_match_kernel(%arg0: i32, %arg1: memref<2x24x128xf32, #tpu.memory_space<vmem>>, %arg2: memref<24x66x128xf32, #tpu.memory_space<vmem>>, %arg3: memref<128x8xf32, #tpu.memory_space<vmem>>, %arg4: memref<2x72x8xf32, #tpu.memory_space<vmem>>, %arg5: memref<2x72x128xf32, #tpu.memory_space<vmem>>) attributes {dimension_semantics = [#tpu.dimension_semantics<parallel>], iteration_bounds = array<i64: 1>, scalar_prefetch = 0 : i64, scratch_operands = 1 : i64, tpu.core_type = #tpu.core_type<tc>, window_params = [{transform_indices = @transform_0, window_bounds = array<i64: 2, 24, 128>}, {pipeline_mode = #tpu.pipeline_mode<synchronous>, transform_indices = @transform_1, window_bounds = array<i64: 24, 66, 128>}, {pipeline_mode = #tpu.pipeline_mode<synchronous>, transform_indices = @transform_2, window_bounds = array<i64: 128, 8>}, {transform_indices = @transform_3, window_bounds = array<i64: 2, 72, 8>}]} {
    %cst = arith.constant 0.000000e+00 : f32
    %0 = vector.broadcast %cst : f32 to vector<2x6x128xf32>
    %c0 = arith.constant 0 : index
    %c66 = arith.constant 66 : index
    %c0_0 = arith.constant 0 : index
    %1 = vector.load %arg5[%c0, %c66, %c0_0] : memref<2x72x128xf32, #tpu.memory_space<vmem>>, vector<2x6x128xf32>
    tpu.vector_store %arg5[%c0, %c66, %c0_0], %0 {strides = array<i32>} : memref<2x72x128xf32, #tpu.memory_space<vmem>>, vector<2x6x128xf32>,
    %c0_i32 = arith.constant 0 : i32
    %c2_i32 = arith.constant 2 : i32
    %2 = arith.addi %c0_i32, %c2_i32 : i32
    %c1_i32 = arith.constant 1 : i32
    scf.for %arg6 = %c0_i32 to %2 step %c1_i32  : i32 {
      %cst_11 = arith.constant 0.000000e+00 : f32
      %9 = vector.broadcast %cst_11 : f32 to vector<66x128xf32>
      %10 = arith.index_cast %arg6 : i32 to index
      %c0_12 = arith.constant 0 : index
      %c0_13 = arith.constant 0 : index
      %11 = vector.load %arg1[%10, %c0_12, %c0_13] : memref<2x24x128xf32, #tpu.memory_space<vmem>>, vector<1x1x128xf32>
      %12 = vector.shape_cast %11 : vector<1x1x128xf32> to vector<1x128xf32>
      %c0_14 = arith.constant 0 : index
      %c0_15 = arith.constant 0 : index
      %c0_16 = arith.constant 0 : index
      %13 = vector.load %arg2[%c0_14, %c0_15, %c0_16] : memref<24x66x128xf32, #tpu.memory_space<vmem>>, vector<1x66x128xf32>
      %14 = vector.shape_cast %13 : vector<1x66x128xf32> to vector<66x128xf32>
      %15 = vector.broadcast %12 : vector<1x128xf32> to vector<66x128xf32>
      %16 = arith.subf %15, %14 : vector<66x128xf32>
      %17 = math.absf %16 : vector<66x128xf32>
      %18 = arith.addf %9, %17 : vector<66x128xf32>
      %19 = arith.index_cast %arg6 : i32 to index
      %c1 = arith.constant 1 : index
      %c0_17 = arith.constant 0 : index
      %20 = vector.load %arg1[%19, %c1, %c0_17] : memref<2x24x128xf32, #tpu.memory_space<vmem>>, vector<1x1x128xf32>
      %21 = vector.shape_cast %20 : vector<1x1x128xf32> to vector<1x128xf32>
      %c1_18 = arith.constant 1 : index
      %c0_19 = arith.constant 0 : index
      %c0_20 = arith.constant 0 : index
      %22 = vector.load %arg2[%c1_18, %c0_19, %c0_20] : memref<24x66x128xf32, #tpu.memory_space<vmem>>, vector<1x66x128xf32>
      %23 = vector.shape_cast %22 : vector<1x66x128xf32> to vector<66x128xf32>
      %24 = vector.broadcast %21 : vector<1x128xf32> to vector<66x128xf32>
      %25 = arith.subf %24, %23 : vector<66x128xf32>
      %26 = math.absf %25 : vector<66x128xf32>
      %27 = arith.addf %18, %26 : vector<66x128xf32>
      %28 = arith.index_cast %arg6 : i32 to index
      %c2 = arith.constant 2 : index
      %c0_21 = arith.constant 0 : index
      %29 = vector.load %arg1[%28, %c2, %c0_21] : memref<2x24x128xf32, #tpu.memory_space<vmem>>, vector<1x1x128xf32>
      %30 = vector.shape_cast %29 : vector<1x1x128xf32> to vector<1x128xf32>
      %c2_22 = arith.constant 2 : index
      %c0_23 = arith.constant 0 : index
      %c0_24 = arith.constant 0 : index
      %31 = vector.load %arg2[%c2_22, %c0_23, %c0_24] : memref<24x66x128xf32, #tpu.memory_space<vmem>>, vector<1x66x128xf32>
      %32 = vector.shape_cast %31 : vector<1x66x128xf32> to vector<66x128xf32>
      %33 = vector.broadcast %30 : vector<1x128xf32> to vector<66x128xf32>
      %34 = arith.subf %33, %32 : vector<66x128xf32>
      %35 = math.absf %34 : vector<66x128xf32>
      %36 = arith.addf %27, %35 : vector<66x128xf32>
      %37 = arith.index_cast %arg6 : i32 to index
      %c3 = arith.constant 3 : index
      %c0_25 = arith.constant 0 : index
      %38 = vector.load %arg1[%37, %c3, %c0_25] : memref<2x24x128xf32, #tpu.memory_space<vmem>>, vector<1x1x128xf32>
      %39 = vector.shape_cast %38 : vector<1x1x128xf32> to vector<1x128xf32>
      %c3_26 = arith.constant 3 : index
      %c0_27 = arith.constant 0 : index
      %c0_28 = arith.constant 0 : index
      %40 = vector.load %arg2[%c3_26, %c0_27, %c0_28] : memref<24x66x128xf32, #tpu.memory_space<vmem>>, vector<1x66x128xf32>
      %41 = vector.shape_cast %40 : vector<1x66x128xf32> to vector<66x128xf32>
      %42 = vector.broadcast %39 : vector<1x128xf32> to vector<66x128xf32>
      %43 = arith.subf %42, %41 : vector<66x128xf32>
      %44 = math.absf %43 : vector<66x128xf32>
      %45 = arith.addf %36, %44 : vector<66x128xf32>
      %46 = arith.index_cast %arg6 : i32 to index
      %c4 = arith.constant 4 : index
      %c0_29 = arith.constant 0 : index
      %47 = vector.load %arg1[%46, %c4, %c0_29] : memref<2x24x128xf32, #tpu.memory_space<vmem>>, vector<1x1x128xf32>
      %48 = vector.shape_cast %47 : vector<1x1x128xf32> to vector<1x128xf32>
      %c4_30 = arith.constant 4 : index
      %c0_31 = arith.constant 0 : index
      %c0_32 = arith.constant 0 : index
      %49 = vector.load %arg2[%c4_30, %c0_31, %c0_32] : memref<24x66x128xf32, #tpu.memory_space<vmem>>, vector<1x66x128xf32>
      %50 = vector.shape_cast %49 : vector<1x66x128xf32> to vector<66x128xf32>
      %51 = vector.broadcast %48 : vector<1x128xf32> to vector<66x128xf32>
      %52 = arith.subf %51, %50 : vector<66x128xf32>
      %53 = math.absf %52 : vector<66x128xf32>
      %54 = arith.addf %45, %53 : vector<66x128xf32>
      %55 = arith.index_cast %arg6 : i32 to index
      %c5 = arith.constant 5 : index
      %c0_33 = arith.constant 0 : index
      %56 = vector.load %arg1[%55, %c5, %c0_33] : memref<2x24x128xf32, #tpu.memory_space<vmem>>, vector<1x1x128xf32>
      %57 = vector.shape_cast %56 : vector<1x1x128xf32> to vector<1x128xf32>
      %c5_34 = arith.constant 5 : index
      %c0_35 = arith.constant 0 : index
      %c0_36 = arith.constant 0 : index
      %58 = vector.load %arg2[%c5_34, %c0_35, %c0_36] : memref<24x66x128xf32, #tpu.memory_space<vmem>>, vector<1x66x128xf32>
      %59 = vector.shape_cast %58 : vector<1x66x128xf32> to vector<66x128xf32>
      %60 = vector.broadcast %57 : vector<1x128xf32> to vector<66x128xf32>
      %61 = arith.subf %60, %59 : vector<66x128xf32>
      %62 = math.absf %61 : vector<66x128xf32>
      %63 = arith.addf %54, %62 : vector<66x128xf32>
      %64 = arith.index_cast %arg6 : i32 to index
      %c6 = arith.constant 6 : index
      %c0_37 = arith.constant 0 : index
      %65 = vector.load %arg1[%64, %c6, %c0_37] : memref<2x24x128xf32, #tpu.memory_space<vmem>>, vector<1x1x128xf32>
      %66 = vector.shape_cast %65 : vector<1x1x128xf32> to vector<1x128xf32>
      %c6_38 = arith.constant 6 : index
      %c0_39 = arith.constant 0 : index
      %c0_40 = arith.constant 0 : index
      %67 = vector.load %arg2[%c6_38, %c0_39, %c0_40] : memref<24x66x128xf32, #tpu.memory_space<vmem>>, vector<1x66x128xf32>
      %68 = vector.shape_cast %67 : vector<1x66x128xf32> to vector<66x128xf32>
      %69 = vector.broadcast %66 : vector<1x128xf32> to vector<66x128xf32>
      %70 = arith.subf %69, %68 : vector<66x128xf32>
      %71 = math.absf %70 : vector<66x128xf32>
      %72 = arith.addf %63, %71 : vector<66x128xf32>
      %73 = arith.index_cast %arg6 : i32 to index
      %c7 = arith.constant 7 : index
      %c0_41 = arith.constant 0 : index
      %74 = vector.load %arg1[%73, %c7, %c0_41] : memref<2x24x128xf32, #tpu.memory_space<vmem>>, vector<1x1x128xf32>
      %75 = vector.shape_cast %74 : vector<1x1x128xf32> to vector<1x128xf32>
      %c7_42 = arith.constant 7 : index
      %c0_43 = arith.constant 0 : index
      %c0_44 = arith.constant 0 : index
      %76 = vector.load %arg2[%c7_42, %c0_43, %c0_44] : memref<24x66x128xf32, #tpu.memory_space<vmem>>, vector<1x66x128xf32>
      %77 = vector.shape_cast %76 : vector<1x66x128xf32> to vector<66x128xf32>
      %78 = vector.broadcast %75 : vector<1x128xf32> to vector<66x128xf32>
      %79 = arith.subf %78, %77 : vector<66x128xf32>
      %80 = math.absf %79 : vector<66x128xf32>
      %81 = arith.addf %72, %80 : vector<66x128xf32>
      %82 = arith.index_cast %arg6 : i32 to index
      %c8 = arith.constant 8 : index
      %c0_45 = arith.constant 0 : index
      %83 = vector.load %arg1[%82, %c8, %c0_45] : memref<2x24x128xf32, #tpu.memory_space<vmem>>, vector<1x1x128xf32>
      %84 = vector.shape_cast %83 : vector<1x1x128xf32> to vector<1x128xf32>
      %c8_46 = arith.constant 8 : index
      %c0_47 = arith.constant 0 : index
      %c0_48 = arith.constant 0 : index
      %85 = vector.load %arg2[%c8_46, %c0_47, %c0_48] : memref<24x66x128xf32, #tpu.memory_space<vmem>>, vector<1x66x128xf32>
      %86 = vector.shape_cast %85 : vector<1x66x128xf32> to vector<66x128xf32>
      %87 = vector.broadcast %84 : vector<1x128xf32> to vector<66x128xf32>
      %88 = arith.subf %87, %86 : vector<66x128xf32>
      %89 = math.absf %88 : vector<66x128xf32>
      %90 = arith.addf %81, %89 : vector<66x128xf32>
      %91 = arith.index_cast %arg6 : i32 to index
      %c9 = arith.constant 9 : index
      %c0_49 = arith.constant 0 : index
      %92 = vector.load %arg1[%91, %c9, %c0_49] : memref<2x24x128xf32, #tpu.memory_space<vmem>>, vector<1x1x128xf32>
      %93 = vector.shape_cast %92 : vector<1x1x128xf32> to vector<1x128xf32>
      %c9_50 = arith.constant 9 : index
      %c0_51 = arith.constant 0 : index
      %c0_52 = arith.constant 0 : index
      %94 = vector.load %arg2[%c9_50, %c0_51, %c0_52] : memref<24x66x128xf32, #tpu.memory_space<vmem>>, vector<1x66x128xf32>
      %95 = vector.shape_cast %94 : vector<1x66x128xf32> to vector<66x128xf32>
      %96 = vector.broadcast %93 : vector<1x128xf32> to vector<66x128xf32>
      %97 = arith.subf %96, %95 : vector<66x128xf32>
      %98 = math.absf %97 : vector<66x128xf32>
      %99 = arith.addf %90, %98 : vector<66x128xf32>
      %100 = arith.index_cast %arg6 : i32 to index
      %c10 = arith.constant 10 : index
      %c0_53 = arith.constant 0 : index
      %101 = vector.load %arg1[%100, %c10, %c0_53] : memref<2x24x128xf32, #tpu.memory_space<vmem>>, vector<1x1x128xf32>
      %102 = vector.shape_cast %101 : vector<1x1x128xf32> to vector<1x128xf32>
      %c10_54 = arith.constant 10 : index
      %c0_55 = arith.constant 0 : index
      %c0_56 = arith.constant 0 : index
      %103 = vector.load %arg2[%c10_54, %c0_55, %c0_56] : memref<24x66x128xf32, #tpu.memory_space<vmem>>, vector<1x66x128xf32>
      %104 = vector.shape_cast %103 : vector<1x66x128xf32> to vector<66x128xf32>
      %105 = vector.broadcast %102 : vector<1x128xf32> to vector<66x128xf32>
      %106 = arith.subf %105, %104 : vector<66x128xf32>
      %107 = math.absf %106 : vector<66x128xf32>
      %108 = arith.addf %99, %107 : vector<66x128xf32>
      %109 = arith.index_cast %arg6 : i32 to index
      %c11 = arith.constant 11 : index
      %c0_57 = arith.constant 0 : index
      %110 = vector.load %arg1[%109, %c11, %c0_57] : memref<2x24x128xf32, #tpu.memory_space<vmem>>, vector<1x1x128xf32>
      %111 = vector.shape_cast %110 : vector<1x1x128xf32> to vector<1x128xf32>
      %c11_58 = arith.constant 11 : index
      %c0_59 = arith.constant 0 : index
      %c0_60 = arith.constant 0 : index
      %112 = vector.load %arg2[%c11_58, %c0_59, %c0_60] : memref<24x66x128xf32, #tpu.memory_space<vmem>>, vector<1x66x128xf32>
      %113 = vector.shape_cast %112 : vector<1x66x128xf32> to vector<66x128xf32>
      %114 = vector.broadcast %111 : vector<1x128xf32> to vector<66x128xf32>
      %115 = arith.subf %114, %113 : vector<66x128xf32>
      %116 = math.absf %115 : vector<66x128xf32>
      %117 = arith.addf %108, %116 : vector<66x128xf32>
      %118 = arith.index_cast %arg6 : i32 to index
      %c12 = arith.constant 12 : index
      %c0_61 = arith.constant 0 : index
      %119 = vector.load %arg1[%118, %c12, %c0_61] : memref<2x24x128xf32, #tpu.memory_space<vmem>>, vector<1x1x128xf32>
      %120 = vector.shape_cast %119 : vector<1x1x128xf32> to vector<1x128xf32>
      %c12_62 = arith.constant 12 : index
      %c0_63 = arith.constant 0 : index
      %c0_64 = arith.constant 0 : index
      %121 = vector.load %arg2[%c12_62, %c0_63, %c0_64] : memref<24x66x128xf32, #tpu.memory_space<vmem>>, vector<1x66x128xf32>
      %122 = vector.shape_cast %121 : vector<1x66x128xf32> to vector<66x128xf32>
      %123 = vector.broadcast %120 : vector<1x128xf32> to vector<66x128xf32>
      %124 = arith.subf %123, %122 : vector<66x128xf32>
      %125 = math.absf %124 : vector<66x128xf32>
      %126 = arith.addf %117, %125 : vector<66x128xf32>
      %127 = arith.index_cast %arg6 : i32 to index
      %c13 = arith.constant 13 : index
      %c0_65 = arith.constant 0 : index
      %128 = vector.load %arg1[%127, %c13, %c0_65] : memref<2x24x128xf32, #tpu.memory_space<vmem>>, vector<1x1x128xf32>
      %129 = vector.shape_cast %128 : vector<1x1x128xf32> to vector<1x128xf32>
      %c13_66 = arith.constant 13 : index
      %c0_67 = arith.constant 0 : index
      %c0_68 = arith.constant 0 : index
      %130 = vector.load %arg2[%c13_66, %c0_67, %c0_68] : memref<24x66x128xf32, #tpu.memory_space<vmem>>, vector<1x66x128xf32>
      %131 = vector.shape_cast %130 : vector<1x66x128xf32> to vector<66x128xf32>
      %132 = vector.broadcast %129 : vector<1x128xf32> to vector<66x128xf32>
      %133 = arith.subf %132, %131 : vector<66x128xf32>
      %134 = math.absf %133 : vector<66x128xf32>
      %135 = arith.addf %126, %134 : vector<66x128xf32>
      %136 = arith.index_cast %arg6 : i32 to index
      %c14 = arith.constant 14 : index
      %c0_69 = arith.constant 0 : index
      %137 = vector.load %arg1[%136, %c14, %c0_69] : memref<2x24x128xf32, #tpu.memory_space<vmem>>, vector<1x1x128xf32>
      %138 = vector.shape_cast %137 : vector<1x1x128xf32> to vector<1x128xf32>
      %c14_70 = arith.constant 14 : index
      %c0_71 = arith.constant 0 : index
      %c0_72 = arith.constant 0 : index
      %139 = vector.load %arg2[%c14_70, %c0_71, %c0_72] : memref<24x66x128xf32, #tpu.memory_space<vmem>>, vector<1x66x128xf32>
      %140 = vector.shape_cast %139 : vector<1x66x128xf32> to vector<66x128xf32>
      %141 = vector.broadcast %138 : vector<1x128xf32> to vector<66x128xf32>
      %142 = arith.subf %141, %140 : vector<66x128xf32>
      %143 = math.absf %142 : vector<66x128xf32>
      %144 = arith.addf %135, %143 : vector<66x128xf32>
      %145 = arith.index_cast %arg6 : i32 to index
      %c15 = arith.constant 15 : index
      %c0_73 = arith.constant 0 : index
      %146 = vector.load %arg1[%145, %c15, %c0_73] : memref<2x24x128xf32, #tpu.memory_space<vmem>>, vector<1x1x128xf32>
      %147 = vector.shape_cast %146 : vector<1x1x128xf32> to vector<1x128xf32>
      %c15_74 = arith.constant 15 : index
      %c0_75 = arith.constant 0 : index
      %c0_76 = arith.constant 0 : index
      %148 = vector.load %arg2[%c15_74, %c0_75, %c0_76] : memref<24x66x128xf32, #tpu.memory_space<vmem>>, vector<1x66x128xf32>
      %149 = vector.shape_cast %148 : vector<1x66x128xf32> to vector<66x128xf32>
      %150 = vector.broadcast %147 : vector<1x128xf32> to vector<66x128xf32>
      %151 = arith.subf %150, %149 : vector<66x128xf32>
      %152 = math.absf %151 : vector<66x128xf32>
      %153 = arith.addf %144, %152 : vector<66x128xf32>
      %154 = arith.index_cast %arg6 : i32 to index
      %c16 = arith.constant 16 : index
      %c0_77 = arith.constant 0 : index
      %155 = vector.load %arg1[%154, %c16, %c0_77] : memref<2x24x128xf32, #tpu.memory_space<vmem>>, vector<1x1x128xf32>
      %156 = vector.shape_cast %155 : vector<1x1x128xf32> to vector<1x128xf32>
      %c16_78 = arith.constant 16 : index
      %c0_79 = arith.constant 0 : index
      %c0_80 = arith.constant 0 : index
      %157 = vector.load %arg2[%c16_78, %c0_79, %c0_80] : memref<24x66x128xf32, #tpu.memory_space<vmem>>, vector<1x66x128xf32>
      %158 = vector.shape_cast %157 : vector<1x66x128xf32> to vector<66x128xf32>
      %159 = vector.broadcast %156 : vector<1x128xf32> to vector<66x128xf32>
      %160 = arith.subf %159, %158 : vector<66x128xf32>
      %161 = math.absf %160 : vector<66x128xf32>
      %162 = arith.addf %153, %161 : vector<66x128xf32>
      %163 = arith.index_cast %arg6 : i32 to index
      %c17 = arith.constant 17 : index
      %c0_81 = arith.constant 0 : index
      %164 = vector.load %arg1[%163, %c17, %c0_81] : memref<2x24x128xf32, #tpu.memory_space<vmem>>, vector<1x1x128xf32>
      %165 = vector.shape_cast %164 : vector<1x1x128xf32> to vector<1x128xf32>
      %c17_82 = arith.constant 17 : index
      %c0_83 = arith.constant 0 : index
      %c0_84 = arith.constant 0 : index
      %166 = vector.load %arg2[%c17_82, %c0_83, %c0_84] : memref<24x66x128xf32, #tpu.memory_space<vmem>>, vector<1x66x128xf32>
      %167 = vector.shape_cast %166 : vector<1x66x128xf32> to vector<66x128xf32>
      %168 = vector.broadcast %165 : vector<1x128xf32> to vector<66x128xf32>
      %169 = arith.subf %168, %167 : vector<66x128xf32>
      %170 = math.absf %169 : vector<66x128xf32>
      %171 = arith.addf %162, %170 : vector<66x128xf32>
      %172 = arith.index_cast %arg6 : i32 to index
      %c18 = arith.constant 18 : index
      %c0_85 = arith.constant 0 : index
      %173 = vector.load %arg1[%172, %c18, %c0_85] : memref<2x24x128xf32, #tpu.memory_space<vmem>>, vector<1x1x128xf32>
      %174 = vector.shape_cast %173 : vector<1x1x128xf32> to vector<1x128xf32>
      %c18_86 = arith.constant 18 : index
      %c0_87 = arith.constant 0 : index
      %c0_88 = arith.constant 0 : index
      %175 = vector.load %arg2[%c18_86, %c0_87, %c0_88] : memref<24x66x128xf32, #tpu.memory_space<vmem>>, vector<1x66x128xf32>
      %176 = vector.shape_cast %175 : vector<1x66x128xf32> to vector<66x128xf32>
      %177 = vector.broadcast %174 : vector<1x128xf32> to vector<66x128xf32>
      %178 = arith.subf %177, %176 : vector<66x128xf32>
      %179 = math.absf %178 : vector<66x128xf32>
      %180 = arith.addf %171, %179 : vector<66x128xf32>
      %181 = arith.index_cast %arg6 : i32 to index
      %c19 = arith.constant 19 : index
      %c0_89 = arith.constant 0 : index
      %182 = vector.load %arg1[%181, %c19, %c0_89] : memref<2x24x128xf32, #tpu.memory_space<vmem>>, vector<1x1x128xf32>
      %183 = vector.shape_cast %182 : vector<1x1x128xf32> to vector<1x128xf32>
      %c19_90 = arith.constant 19 : index
      %c0_91 = arith.constant 0 : index
      %c0_92 = arith.constant 0 : index
      %184 = vector.load %arg2[%c19_90, %c0_91, %c0_92] : memref<24x66x128xf32, #tpu.memory_space<vmem>>, vector<1x66x128xf32>
      %185 = vector.shape_cast %184 : vector<1x66x128xf32> to vector<66x128xf32>
      %186 = vector.broadcast %183 : vector<1x128xf32> to vector<66x128xf32>
      %187 = arith.subf %186, %185 : vector<66x128xf32>
      %188 = math.absf %187 : vector<66x128xf32>
      %189 = arith.addf %180, %188 : vector<66x128xf32>
      %190 = arith.index_cast %arg6 : i32 to index
      %c20 = arith.constant 20 : index
      %c0_93 = arith.constant 0 : index
      %191 = vector.load %arg1[%190, %c20, %c0_93] : memref<2x24x128xf32, #tpu.memory_space<vmem>>, vector<1x1x128xf32>
      %192 = vector.shape_cast %191 : vector<1x1x128xf32> to vector<1x128xf32>
      %c20_94 = arith.constant 20 : index
      %c0_95 = arith.constant 0 : index
      %c0_96 = arith.constant 0 : index
      %193 = vector.load %arg2[%c20_94, %c0_95, %c0_96] : memref<24x66x128xf32, #tpu.memory_space<vmem>>, vector<1x66x128xf32>
      %194 = vector.shape_cast %193 : vector<1x66x128xf32> to vector<66x128xf32>
      %195 = vector.broadcast %192 : vector<1x128xf32> to vector<66x128xf32>
      %196 = arith.subf %195, %194 : vector<66x128xf32>
      %197 = math.absf %196 : vector<66x128xf32>
      %198 = arith.addf %189, %197 : vector<66x128xf32>
      %199 = arith.index_cast %arg6 : i32 to index
      %c21 = arith.constant 21 : index
      %c0_97 = arith.constant 0 : index
      %200 = vector.load %arg1[%199, %c21, %c0_97] : memref<2x24x128xf32, #tpu.memory_space<vmem>>, vector<1x1x128xf32>
      %201 = vector.shape_cast %200 : vector<1x1x128xf32> to vector<1x128xf32>
      %c21_98 = arith.constant 21 : index
      %c0_99 = arith.constant 0 : index
      %c0_100 = arith.constant 0 : index
      %202 = vector.load %arg2[%c21_98, %c0_99, %c0_100] : memref<24x66x128xf32, #tpu.memory_space<vmem>>, vector<1x66x128xf32>
      %203 = vector.shape_cast %202 : vector<1x66x128xf32> to vector<66x128xf32>
      %204 = vector.broadcast %201 : vector<1x128xf32> to vector<66x128xf32>
      %205 = arith.subf %204, %203 : vector<66x128xf32>
      %206 = math.absf %205 : vector<66x128xf32>
      %207 = arith.addf %198, %206 : vector<66x128xf32>
      %208 = arith.index_cast %arg6 : i32 to index
      %c22 = arith.constant 22 : index
      %c0_101 = arith.constant 0 : index
      %209 = vector.load %arg1[%208, %c22, %c0_101] : memref<2x24x128xf32, #tpu.memory_space<vmem>>, vector<1x1x128xf32>
      %210 = vector.shape_cast %209 : vector<1x1x128xf32> to vector<1x128xf32>
      %c22_102 = arith.constant 22 : index
      %c0_103 = arith.constant 0 : index
      %c0_104 = arith.constant 0 : index
      %211 = vector.load %arg2[%c22_102, %c0_103, %c0_104] : memref<24x66x128xf32, #tpu.memory_space<vmem>>, vector<1x66x128xf32>
      %212 = vector.shape_cast %211 : vector<1x66x128xf32> to vector<66x128xf32>
      %213 = vector.broadcast %210 : vector<1x128xf32> to vector<66x128xf32>
      %214 = arith.subf %213, %212 : vector<66x128xf32>
      %215 = math.absf %214 : vector<66x128xf32>
      %216 = arith.addf %207, %215 : vector<66x128xf32>
      %217 = arith.index_cast %arg6 : i32 to index
      %c23 = arith.constant 23 : index
      %c0_105 = arith.constant 0 : index
      %218 = vector.load %arg1[%217, %c23, %c0_105] : memref<2x24x128xf32, #tpu.memory_space<vmem>>, vector<1x1x128xf32>
      %219 = vector.shape_cast %218 : vector<1x1x128xf32> to vector<1x128xf32>
      %c23_106 = arith.constant 23 : index
      %c0_107 = arith.constant 0 : index
      %c0_108 = arith.constant 0 : index
      %220 = vector.load %arg2[%c23_106, %c0_107, %c0_108] : memref<24x66x128xf32, #tpu.memory_space<vmem>>, vector<1x66x128xf32>
      %221 = vector.shape_cast %220 : vector<1x66x128xf32> to vector<66x128xf32>
      %222 = vector.broadcast %219 : vector<1x128xf32> to vector<66x128xf32>
      %223 = arith.subf %222, %221 : vector<66x128xf32>
      %224 = math.absf %223 : vector<66x128xf32>
      %225 = arith.addf %216, %224 : vector<66x128xf32>
      %226 = arith.index_cast %arg6 : i32 to index
      %c0_109 = arith.constant 0 : index
      %c0_110 = arith.constant 0 : index
      %227 = vector.load %arg5[%226, %c0_109, %c0_110] : memref<2x72x128xf32, #tpu.memory_space<vmem>>, vector<1x66x128xf32>
      %228 = vector.shape_cast %227 : vector<1x66x128xf32> to vector<66x128xf32>
      %229 = vector.shape_cast %225 : vector<66x128xf32> to vector<1x66x128xf32>
      tpu.vector_store %arg5[%226, %c0_109, %c0_110], %229 {strides = array<i32>} : memref<2x72x128xf32, #tpu.memory_space<vmem>>, vector<1x66x128xf32>,
    }
    %c2_i32_1 = arith.constant 2 : i32
    %c0_2 = arith.constant 0 : index
    %c0_3 = arith.constant 0 : index
    %c0_4 = arith.constant 0 : index
    %3 = vector.load %arg5[%c0_2, %c0_3, %c0_4] : memref<2x72x128xf32, #tpu.memory_space<vmem>>, vector<2x72x128xf32>
    %4 = vector.shape_cast %3 : vector<2x72x128xf32> to vector<144x128xf32>
    %c0_5 = arith.constant 0 : index
    %c0_6 = arith.constant 0 : index
    %5 = vector.load %arg3[%c0_5, %c0_6] : memref<128x8xf32, #tpu.memory_space<vmem>>, vector<128x8xf32>
    %cst_7 = arith.constant dense<0.000000e+00> : vector<144x8xf32>
    %6 = tpu.matmul %4, %5, %cst_7 {dimension_numbers = #tpu.dot_dimension_numbers<[1], [0], [0], [1], [0, 0, 1, 1], [], []>} : vector<144x128xf32>, vector<128x8xf32>, vector<144x8xf32> -> vector<144x8xf32>
    %7 = vector.shape_cast %6 : vector<144x8xf32> to vector<2x72x8xf32>
    %c0_8 = arith.constant 0 : index
    %c0_9 = arith.constant 0 : index
    %c0_10 = arith.constant 0 : index
    %8 = vector.load %arg4[%c0_8, %c0_9, %c0_10] : memref<2x72x8xf32, #tpu.memory_space<vmem>>, vector<2x72x8xf32>
    tpu.vector_store %arg4[%c0_8, %c0_9, %c0_10], %7 {strides = array<i32>} : memref<2x72x8xf32, #tpu.memory_space<vmem>>, vector<2x72x8xf32>,
    return
  }
  func.func @transform_0(%arg0: i32) -> (i32, i32, i32) {
    %c0_i32 = arith.constant 0 : i32
    %c0_i32_0 = arith.constant 0 : i32
    %c0_i32_1 = arith.constant 0 : i32
    return %arg0, %c0_i32, %c0_i32_0 : i32, i32, i32
  }
  func.func @transform_1(%arg0: i32) -> (i32, i32, i32) {
    %c0_i32 = arith.constant 0 : i32
    %c0_i32_0 = arith.constant 0 : i32
    %c0_i32_1 = arith.constant 0 : i32
    %c0_i32_2 = arith.constant 0 : i32
    return %c0_i32, %c0_i32_0, %c0_i32_1 : i32, i32, i32
  }
  func.func @transform_2(%arg0: i32) -> (i32, i32) {
    %c0_i32 = arith.constant 0 : i32
    %c0_i32_0 = arith.constant 0 : i32
    %c0_i32_1 = arith.constant 0 : i32
    return %c0_i32, %c0_i32_0 : i32, i32
  }
  func.func @transform_3(%arg0: i32) -> (i32, i32, i32) {
    %c0_i32 = arith.constant 0 : i32
    %c0_i32_0 = arith.constant 0 : i32
    %c0_i32_1 = arith.constant 0 : i32
    return %arg0, %c0_i32, %c0_i32_0 : i32, i32, i32
  }
}

</mosaic_0001>

<bundles_post_ra>
// kernel: forward.1
= control target key start
LH: loop header
LB: loop body
LE: loop exit
PB: predicated region body
PF: predicated region fallthrough
CT: control target
= control target key end

     0   :  { %8 = vsyncpa [#allocation4], 0  ;;  %s1242_s15 = smov [#allocation3]   ;;  %s1243_s17 = smov 128   ;;  %s1551_s0 = inlined_call_operand.vmem [shape: f32[2,24,128], index: 0, kind: input, shape index: {}]   ;;  %s1552_s1 = inlined_call_operand.hbm [shape: f32[24,66,128], index: 1, kind: input, shape index: {}]   ;;  %s1553_s2 = inlined_call_operand.vmem [shape: f32[128,8], index: 2, kind: input, shape index: {}]   ;;  %s1554_s3 = inlined_call_operand.vmem [shape: f32[2,72,8], index: 3, kind: output, shape index: {}]  }
   0x1   :  { %s15_s14 = sshll.u32 %s1552_s1, 4  ;;  %s17_s16 = sshll.u32 %s1242_s15, 4  ;;  %s16_s14 = int_to_ptr.hbm [resolvable:$true] %s15_s14  ;;  %s18_s16 = int_to_ptr.vmem [resolvable:$true] %s17_s16 }
   0x2   :  { %s1244_s18 = smov 8  }
   0x3   :  { %23 = dma.hbm_to_vmem [thread:$0]  %s16_s14, 27648, %s18_s16, [#allocation4], %s1243_s17, %s1243_s17, %s1244_s18  }
   0x4   :  { %1236 = dma.done.wait [#allocation4], 27648  }
   0x5   :  { %1237 = vsyncadd [#allocation4], 4294939648  ;;  %v1245_v0 = vmov 0.0   ;;  %s1269_s19 = smov 0  }
   0x6   :  { %30 = vst [vmem:[#allocation2 + $0x42] sm:$0x3f] %v1245_v0 }
   0x7   :  { %31 = vst [vmem:[#allocation2 + $0x8a] sm:$0x3f] %v1245_v0 }
   0x8 LB: > { %s38_s1 = smul.u32 24, %s1240_s19  ;;  %v41_v1 = vld [vmem:[#allocation3] sm:$0xff]  ;;  %v42_v2 = vld [vmem:[#allocation3 + $0x8] sm:$0xff]  ;;  %v43_v3 = vld [vmem:[#allocation3 + $0x10] sm:$0xff]  ;;  %s1240_s19 = sphi %s1269_s19, %s37_s19  }
   0x9   : > { %v44_v4 = vld [vmem:[#allocation3 + $0x18] sm:$0xff]  ;;  %v45_v5 = vld [vmem:[#allocation3 + $0x20] sm:$0xff]  ;;  %v46_v6 = vld [vmem:[#allocation3 + $0x28] sm:$0xff]  ;;  %s975_s23 = smul.u32 72, %s1240_s19  ;;  %s37_s19 = sadd.s32 1, %s1240_s19  }
   0xa   : > { %s1278_s22 = scalar_lea.vmem %s1551_s0, %s38_s1  ;;  %v47_v7 = vld [vmem:[#allocation3 + $0x30] sm:$0xff]  ;;  %v48_v8 = vld [vmem:[#allocation3 + $0x38] sm:$0xff]  ;;  %v49_v10 = vld [vmem:[#allocation3 + $0x40] sm:$0x3]  ;;  %p34_p0 = scmp.ge.s32.totalorder %s37_s19, 2  }
   0xb   : > { %v1184_v9 = vld [vmem:[%s1278_s22] ss:$0 sm:$0xff]  ;;  %v80_v11 = vld [vmem:[#allocation3 + $0x48] sm:$0xff]  ;;  %v82_v17 = vld [vmem:[#allocation3 + $0x58] sm:$0xff]  ;;  %s976_s24 = scalar_lea.vmem [#allocation2], %s975_s23  ;;  %vm1091_vm0 = vcmask (%p34_p0), 64512  }
   0xc   : > { %v81_v12 = vld [vmem:[#allocation3 + $0x50] sm:$0xff]  ;;  %v51_v13 = vsub.f32 %v1184_v9, %v41_v1  ;;  %v52_v14 = vsub.f32 %v1184_v9, %v42_v2  ;;  %v53_v15 = vsub.f32 %v1184_v9, %v43_v3  ;;  %v54_v16 = vsub.f32 %v1184_v9, %v44_v4  ;;  %v83_v18 = vld [vmem:[#allocation3 + $0x60] sm:$0xff]  ;;  %v84_v19 = vld [vmem:[#allocation3 + $0x68] sm:$0xff] }
   0xd   : > { %v85_v20 = vld [vmem:[#allocation3 + $0x70] sm:$0xff]  ;;  %v55_v22 = vsub.f32 %v1184_v9, %v45_v5  ;;  %v56_v23 = vsub.f32 %v1184_v9, %v46_v6  ;;  %v57_v24 = vsub.f32 %v1184_v9, %v47_v7  ;;  %v58_v25 = vsub.f32 %v1184_v9, %v48_v8  ;;  %v86_v26 = vld [vmem:[#allocation3 + $0x78] sm:$0xff]  ;;  %v87_v27 = vld [vmem:[#allocation3 + $0x80] sm:$0xff] }
   0xe   : > { %v1185_v21 = vld [vmem:[%s1278_s22 + $0x1] ss:$0 sm:$0xff]  ;;  %v88_v28 = vld [vmem:[#allocation3 + $0x88] sm:$0x3]  ;;  %v59_v29 = vsub.f32 %v1184_v9, %v49_v10  ;;  %v60_v30 = vand.u32 2147483647, %v51_v13 }
   0xf   : > { %v61_v31 = vand.u32 2147483647, %v52_v14  ;;  %v62_v32 = vand.u32 2147483647, %v53_v15  ;;  %v63_v33 = vand.u32 2147483647, %v54_v16  ;;  %v90_v36 = vsub.f32 %v1185_v21, %v80_v11 }
  0x10   : > { %v64_v34 = vand.u32 2147483647, %v55_v22  ;;  %v65_v35 = vand.u32 2147483647, %v56_v23  ;;  %v66_v37 = vand.u32 2147483647, %v57_v24  ;;  %v91_v40 = vsub.f32 %v1185_v21, %v81_v12 }
  0x11   : > { %v67_v38 = vand.u32 2147483647, %v58_v25  ;;  %v68_v39 = vand.u32 2147483647, %v59_v29  ;;  %v92_v41 = vsub.f32 %v1185_v21, %v82_v17  ;;  %v93_v42 = vsub.f32 %v1185_v21, %v83_v18  ;;  %v119_v49 = vld [vmem:[#allocation3 + $0x90] sm:$0xff]  ;;  %v120_v50 = vld [vmem:[#allocation3 + $0x98] sm:$0xff] }
  0x12   : > { %v94_v43 = vsub.f32 %v1185_v21, %v84_v19  ;;  %v95_v44 = vsub.f32 %v1185_v21, %v85_v20  ;;  %v96_v45 = vsub.f32 %v1185_v21, %v86_v26  ;;  %v97_v46 = vsub.f32 %v1185_v21, %v87_v27  ;;  %v121_v54 = vld [vmem:[#allocation3 + $0xa0] sm:$0xff]  ;;  %v122_v55 = vld [vmem:[#allocation3 + $0xa8] sm:$0xff]  ;;  %v123_v56 = vld [vmem:[#allocation3 + $0xb0] sm:$0xff] }
  0x13   : > { %v98_v47 = vsub.f32 %v1185_v21, %v88_v28  ;;  %v99_v48 = vand.u32 2147483647, %v90_v36  ;;  %v100_v51 = vand.u32 2147483647, %v91_v40  ;;  %v101_v52 = vand.u32 2147483647, %v92_v41 }
  0x14   : > { %v102_v53 = vand.u32 2147483647, %v93_v42  ;;  %v124_v57 = vld [vmem:[#allocation3 + $0xb8] sm:$0xff]  ;;  %v103_v58 = vand.u32 2147483647, %v94_v43  ;;  %v125_v59 = vld [vmem:[#allocation3 + $0xc0] sm:$0xff] }
  0x15   : > { %v126_v60 = vld [vmem:[#allocation3 + $0xc8] sm:$0xff]  ;;  %v127_v61 = vld [vmem:[#allocation3 + $0xd0] sm:$0x3]  ;;  %v104_v62 = vand.u32 2147483647, %v95_v44  ;;  %v108_v0 = vadd.f32 %v99_v48, %v60_v30  ;;  %v109_v4 = vadd.f32 %v100_v51, %v61_v31  ;;  %v110_v5 = vadd.f32 %v101_v52, %v62_v32  ;;  %v158_v18 = vld [vmem:[#allocation3 + $0xd8] sm:$0xff] }
  0x16   : > { %v105_v63 = vand.u32 2147483647, %v96_v45  ;;  %v1186_v1 = vld [vmem:[%s1278_s22 + $0x2] ss:$0 sm:$0xff]  ;;  %v106_v2 = vand.u32 2147483647, %v97_v46  ;;  %v111_v6 = vadd.f32 %v102_v53, %v63_v33  ;;  %v112_v7 = vadd.f32 %v103_v58, %v64_v34 }
  0x17   : > { %v107_v3 = vand.u32 2147483647, %v98_v47  ;;  %v129_v8 = vsub.f32 %v1186_v1, %v119_v49  ;;  %v130_v9 = vsub.f32 %v1186_v1, %v120_v50  ;;  %v131_v10 = vsub.f32 %v1186_v1, %v121_v54  ;;  %v159_v19 = vld [vmem:[#allocation3 + $0xe0] sm:$0xff]  ;;  %v1187_v20 = vld [vmem:[%s1278_s22 + $0x3] ss:$0 sm:$0xff]  ;;  %v160_v29 = vld [vmem:[#allocation3 + $0xe8] sm:$0xff] }
  0x18   : > { %v132_v11 = vsub.f32 %v1186_v1, %v122_v55  ;;  %v133_v12 = vsub.f32 %v1186_v1, %v123_v56  ;;  %v134_v13 = vsub.f32 %v1186_v1, %v124_v57  ;;  %v135_v14 = vsub.f32 %v1186_v1, %v125_v59  ;;  %v161_v30 = vld [vmem:[#allocation3 + $0xf0] sm:$0xff]  ;;  %v162_v36 = vld [vmem:[#allocation3 + $0xf8] sm:$0xff]  ;;  %v163_v40 = vld [vmem:[#allocation3 + $0x100] sm:$0xff] }
  0x19   : > { %v136_v15 = vsub.f32 %v1186_v1, %v126_v60  ;;  %v137_v16 = vsub.f32 %v1186_v1, %v127_v61  ;;  %v138_v17 = vand.u32 2147483647, %v129_v8  ;;  %v113_v21 = vadd.f32 %v104_v62, %v65_v35  ;;  %v164_v44 = vld [vmem:[#allocation3 + $0x108] sm:$0xff]  ;;  %v165_v45 = vld [vmem:[#allocation3 + $0x110] sm:$0xff]  ;;  %v166_v46 = vld [vmem:[#allocation3 + $0x118] sm:$0x3] }
  0x1a   : > { %v139_v22 = vand.u32 2147483647, %v130_v9  ;;  %v140_v23 = vand.u32 2147483647, %v131_v10  ;;  %v141_v24 = vand.u32 2147483647, %v132_v11  ;;  %v114_v25 = vadd.f32 %v105_v63, %v66_v37 }
  0x1b   : > { %v115_v26 = vadd.f32 %v106_v2, %v67_v38  ;;  %v142_v27 = vand.u32 2147483647, %v133_v12  ;;  %v143_v28 = vand.u32 2147483647, %v134_v13  ;;  %v116_v31 = vadd.f32 %v107_v3, %v68_v39  ;;  %v1188_v52 = vld [vmem:[%s1278_s22 + $0x4] ss:$0 sm:$0xff] }
  0x1c   : > { %v144_v32 = vand.u32 2147483647, %v135_v14  ;;  %v145_v33 = vand.u32 2147483647, %v136_v15  ;;  %v147_v34 = vadd.f32 %v138_v17, %v108_v0  ;;  %v146_v41 = vand.u32 2147483647, %v137_v16 }
  0x1d   : > { %v148_v42 = vadd.f32 %v139_v22, %v109_v4  ;;  %v149_v43 = vadd.f32 %v140_v23, %v110_v5  ;;  %v150_v35 = vadd.f32 %v141_v24, %v111_v6  ;;  %v151_v37 = vadd.f32 %v142_v27, %v112_v7  ;;  %v197_v57 = vld [vmem:[#allocation3 + $0x120] sm:$0xff]  ;;  %v198_v58 = vld [vmem:[#allocation3 + $0x128] sm:$0xff]  ;;  %v199_v59 = vld [vmem:[#allocation3 + $0x130] sm:$0xff] }
  0x1e   : > { %v152_v38 = vadd.f32 %v143_v28, %v113_v21  ;;  %v168_v47 = vsub.f32 %v1187_v20, %v158_v18  ;;  %v169_v48 = vsub.f32 %v1187_v20, %v159_v19  ;;  %v170_v49 = vsub.f32 %v1187_v20, %v160_v29  ;;  %v200_v4 = vld [vmem:[#allocation3 + $0x138] sm:$0xff]  ;;  %v201_v5 = vld [vmem:[#allocation3 + $0x140] sm:$0xff]  ;;  %v202_v9 = vld [vmem:[#allocation3 + $0x148] sm:$0xff] }
  0x1f   : > { %v171_v50 = vsub.f32 %v1187_v20, %v161_v30  ;;  %v172_v39 = vsub.f32 %v1187_v20, %v162_v36  ;;  %v173_v51 = vsub.f32 %v1187_v20, %v163_v40  ;;  %v174_v53 = vsub.f32 %v1187_v20, %v164_v44  ;;  %v203_v10 = vld [vmem:[#allocation3 + $0x150] sm:$0xff]  ;;  %v204_v16 = vld [vmem:[#allocation3 + $0x158] sm:$0xff]  ;;  %v205_v17 = vld [vmem:[#allocation3 + $0x160] sm:$0x3] }
  0x20   : > { %v175_v54 = vsub.f32 %v1187_v20, %v165_v45  ;;  %v176_v55 = vsub.f32 %v1187_v20, %v166_v46  ;;  %v177_v56 = vand.u32 2147483647, %v168_v47  ;;  %v153_v60 = vadd.f32 %v144_v32, %v114_v25  ;;  %v1286_v22 = vld [vmem:[%s1278_s22 + $0x5] ss:$0 sm:$0xff]  ;;  %v236_v27 = vld [vmem:[#allocation3 + $0x168] sm:$0xff] }
  0x21   : > { %v178_v61 = vand.u32 2147483647, %v169_v48  ;;  %v179_v62 = vand.u32 2147483647, %v170_v49  ;;  %v180_v63 = vand.u32 2147483647, %v171_v50  ;;  %v154_v0 = vadd.f32 %v145_v33, %v115_v26 }
  0x22   : > { %v155_v1 = vadd.f32 %v146_v41, %v116_v31  ;;  %v181_v2 = vand.u32 2147483647, %v172_v39  ;;  %v182_v3 = vand.u32 2147483647, %v173_v51  ;;  %v183_v6 = vand.u32 2147483647, %v174_v53 }
  0x23   : > { %v184_v7 = vand.u32 2147483647, %v175_v54  ;;  %v186_v8 = vadd.f32 %v177_v56, %v147_v34  ;;  %v207_v11 = vsub.f32 %v1188_v52, %v197_v57  ;;  %v185_v12 = vand.u32 2147483647, %v176_v55  ;;  %v237_v32 = vld [vmem:[#allocation3 + $0x170] sm:$0xff]  ;;  %v238_v33 = vld [vmem:[#allocation3 + $0x178] sm:$0xff] }
  0x24   : > { %v187_v13 = vadd.f32 %v178_v61, %v148_v42  ;;  %v188_v14 = vadd.f32 %v179_v62, %v149_v43  ;;  %v189_v15 = vadd.f32 %v180_v63, %v150_v35  ;;  %v190_v18 = vadd.f32 %v181_v2, %v151_v37  ;;  %v239_v34 = vld [vmem:[#allocation3 + $0x180] sm:$0xff]  ;;  %v240_v43 = vld [vmem:[#allocation3 + $0x188] sm:$0xff]  ;;  %v241_v46 = vld [vmem:[#allocation3 + $0x190] sm:$0xff] }
  0x25   : > { %v191_v19 = vadd.f32 %v182_v3, %v152_v38  ;;  %v208_v20 = vsub.f32 %v1188_v52, %v198_v58  ;;  %v209_v21 = vsub.f32 %v1188_v52, %v199_v59  ;;  %v210_v23 = vsub.f32 %v1188_v52, %v200_v4  ;;  %v242_v37 = vld [vmem:[#allocation3 + $0x198] sm:$0xff]  ;;  %v243_v38 = vld [vmem:[#allocation3 + $0x1a0] sm:$0xff]  ;;  %v244_v55 = vld [vmem:[#allocation3 + $0x1a8] sm:$0x3] }
  0x26   : > { %v211_v24 = vsub.f32 %v1188_v52, %v201_v5  ;;  %v212_v25 = vsub.f32 %v1188_v52, %v202_v9  ;;  %v213_v26 = vsub.f32 %v1188_v52, %v203_v10  ;;  %v214_v28 = vsub.f32 %v1188_v52, %v204_v16  ;;  %v279_v9 = vld [vmem:[#allocation3 + $0x1d0] sm:$0xff] }
  0x27   : > { %v215_v29 = vsub.f32 %v1188_v52, %v205_v17  ;;  %v216_v30 = vand.u32 2147483647, %v207_v11  ;;  %v217_v31 = vand.u32 2147483647, %v208_v20  ;;  %v192_v36 = vadd.f32 %v183_v6, %v153_v60  ;;  %v1293_v60 = vld [vmem:[%s1278_s22 + $0x6] ss:$0 sm:$0xff] }
  0x28   : > { %v218_v40 = vand.u32 2147483647, %v209_v21  ;;  %v219_v41 = vand.u32 2147483647, %v210_v23  ;;  %v220_v42 = vand.u32 2147483647, %v211_v24  ;;  %v193_v35 = vadd.f32 %v184_v7, %v154_v0 }
  0x29   : > { %v194_v44 = vadd.f32 %v185_v12, %v155_v1  ;;  %v221_v45 = vand.u32 2147483647, %v212_v25  ;;  %v246_v47 = vsub.f32 %v1286_v22, %v236_v27  ;;  %v222_v48 = vand.u32 2147483647, %v213_v26  ;;  %v275_v1 = vld [vmem:[#allocation3 + $0x1b0] sm:$0xff]  ;;  %v276_v6 = vld [vmem:[#allocation3 + $0x1b8] sm:$0xff] }
  0x2a   : > { %v223_v49 = vand.u32 2147483647, %v214_v28  ;;  %v224_v50 = vand.u32 2147483647, %v215_v29  ;;  %v225_v39 = vadd.f32 %v216_v30, %v186_v8  ;;  %v226_v51 = vadd.f32 %v217_v31, %v187_v13  ;;  %v277_v7 = vld [vmem:[#allocation3 + $0x1c0] sm:$0xff]  ;;  %v278_v8 = vld [vmem:[#allocation3 + $0x1c8] sm:$0xff] }
  0x2b   : > { %v227_v52 = vadd.f32 %v218_v40, %v188_v14  ;;  %v228_v53 = vadd.f32 %v219_v41, %v189_v15  ;;  %v229_v54 = vadd.f32 %v220_v42, %v190_v18  ;;  %v230_v56 = vadd.f32 %v221_v45, %v191_v19  ;;  %v280_v17 = vld [vmem:[#allocation3 + $0x1d8] sm:$0xff]  ;;  %v281_v18 = vld [vmem:[#allocation3 + $0x1e0] sm:$0xff]  ;;  %v282_v19 = vld [vmem:[#allocation3 + $0x1e8] sm:$0xff] }
  0x2c   : > { %v247_v57 = vsub.f32 %v1286_v22, %v237_v32  ;;  %v248_v58 = vsub.f32 %v1286_v22, %v238_v33  ;;  %v249_v59 = vsub.f32 %v1286_v22, %v239_v34  ;;  %v250_v61 = vsub.f32 %v1286_v22, %v240_v43  ;;  %v283_v25 = vld [vmem:[#allocation3 + $0x1f0] sm:$0x3]  ;;  %v1306_v34 = vld [vmem:[%s1278_s22 + $0x7] ss:$0 sm:$0xff]  ;;  %v314_v43 = vld [vmem:[#allocation3 + $0x1f8] sm:$0xff] }
  0x2d   : > { %v251_v62 = vsub.f32 %v1286_v22, %v241_v46  ;;  %v252_v63 = vsub.f32 %v1286_v22, %v242_v37  ;;  %v253_v0 = vsub.f32 %v1286_v22, %v243_v38  ;;  %v254_v2 = vsub.f32 %v1286_v22, %v244_v55  ;;  %v316_v38 = vld [vmem:[#allocation3 + $0x208] sm:$0xff] }
  0x2e   : > { %v255_v3 = vand.u32 2147483647, %v246_v47  ;;  %v256_v4 = vand.u32 2147483647, %v247_v57  ;;  %v257_v5 = vand.u32 2147483647, %v248_v58  ;;  %v231_v10 = vadd.f32 %v222_v48, %v192_v36 }
  0x2f   : > { %v258_v11 = vand.u32 2147483647, %v249_v59  ;;  %v259_v12 = vand.u32 2147483647, %v250_v61  ;;  %v260_v13 = vand.u32 2147483647, %v251_v62  ;;  %v232_v14 = vadd.f32 %v223_v49, %v193_v35 }
  0x30   : > { %v233_v15 = vadd.f32 %v224_v50, %v194_v44  ;;  %v261_v16 = vand.u32 2147483647, %v252_v63  ;;  %v285_v20 = vsub.f32 %v1293_v60, %v275_v1  ;;  %v262_v21 = vand.u32 2147483647, %v253_v0  ;;  %v315_v35 = vld [vmem:[#allocation3 + $0x200] sm:$0xff]  ;;  %v317_v47 = vld [vmem:[#allocation3 + $0x210] sm:$0xff] }
  0x31   : > { %v263_v22 = vand.u32 2147483647, %v254_v2  ;;  %v264_v23 = vadd.f32 %v255_v3, %v225_v39  ;;  %v265_v24 = vadd.f32 %v256_v4, %v226_v51  ;;  %v266_v26 = vadd.f32 %v257_v5, %v227_v52  ;;  %v318_v48 = vld [vmem:[#allocation3 + $0x218] sm:$0xff]  ;;  %v320_v55 = vld [vmem:[#allocation3 + $0x228] sm:$0xff] }
  0x32   : > { %v267_v27 = vadd.f32 %v258_v11, %v228_v53  ;;  %v268_v28 = vadd.f32 %v259_v12, %v229_v54  ;;  %v269_v29 = vadd.f32 %v260_v13, %v230_v56  ;;  %v286_v30 = vsub.f32 %v1293_v60, %v276_v6  ;;  %v319_v54 = vld [vmem:[#allocation3 + $0x220] sm:$0xff]  ;;  %v321_v56 = vld [vmem:[#allocation3 + $0x230] sm:$0xff]  ;;  %v322_v63 = vld [vmem:[#allocation3 + $0x238] sm:$0x3] }
  0x33   : > { %v287_v31 = vsub.f32 %v1293_v60, %v277_v7  ;;  %v288_v32 = vsub.f32 %v1293_v60, %v278_v8  ;;  %v289_v33 = vsub.f32 %v1293_v60, %v279_v9  ;;  %v290_v36 = vsub.f32 %v1293_v60, %v280_v17  ;;  %v1192_v8 = vld [vmem:[%s1278_s22 + $0x8] ss:$0 sm:$0xff]  ;;  %v353_v13 = vld [vmem:[#allocation3 + $0x240] sm:$0xff] }
  0x34   : > { %v291_v40 = vsub.f32 %v1293_v60, %v281_v18  ;;  %v292_v41 = vsub.f32 %v1293_v60, %v282_v19  ;;  %v293_v42 = vsub.f32 %v1293_v60, %v283_v25  ;;  %v270_v44 = vadd.f32 %v261_v16, %v231_v10  ;;  %v357_v25 = vld [vmem:[#allocation3 + $0x260] sm:$0xff] }
  0x35   : > { %v294_v45 = vand.u32 2147483647, %v285_v20  ;;  %v295_v46 = vand.u32 2147483647, %v286_v30  ;;  %v296_v37 = vand.u32 2147483647, %v287_v31  ;;  %v271_v49 = vadd.f32 %v262_v21, %v232_v14 }
  0x36   : > { %v297_v50 = vand.u32 2147483647, %v288_v32  ;;  %v298_v39 = vand.u32 2147483647, %v289_v33  ;;  %v299_v51 = vand.u32 2147483647, %v290_v36  ;;  %v272_v52 = vadd.f32 %v263_v22, %v233_v15 }
  0x37   : > { %v300_v53 = vand.u32 2147483647, %v291_v40  ;;  %v324_v57 = vsub.f32 %v1306_v34, %v314_v43  ;;  %v325_v58 = vsub.f32 %v1306_v34, %v315_v35  ;;  %v301_v59 = vand.u32 2147483647, %v292_v41  ;;  %v354_v14 = vld [vmem:[#allocation3 + $0x248] sm:$0xff]  ;;  %v355_v15 = vld [vmem:[#allocation3 + $0x250] sm:$0xff] }
  0x38   : > { %v302_v60 = vand.u32 2147483647, %v293_v42  ;;  %v303_v61 = vadd.f32 %v294_v45, %v264_v23  ;;  %v304_v62 = vadd.f32 %v295_v46, %v265_v24  ;;  %v305_v0 = vadd.f32 %v296_v37, %v266_v26  ;;  %v356_v20 = vld [vmem:[#allocation3 + $0x258] sm:$0xff]  ;;  %v358_v26 = vld [vmem:[#allocation3 + $0x268] sm:$0xff]  ;;  %v359_v30 = vld [vmem:[#allocation3 + $0x270] sm:$0xff] }
  0x39   : > { %v306_v1 = vadd.f32 %v297_v50, %v267_v27  ;;  %v307_v2 = vadd.f32 %v298_v39, %v268_v28  ;;  %v308_v3 = vadd.f32 %v299_v51, %v269_v29  ;;  %v326_v4 = vsub.f32 %v1306_v34, %v316_v38  ;;  %v360_v31 = vld [vmem:[#allocation3 + $0x278] sm:$0xff]  ;;  %v361_v41 = vld [vmem:[#allocation3 + $0x280] sm:$0x3] }
  0x3a   : > { %v327_v5 = vsub.f32 %v1306_v34, %v317_v47  ;;  %v328_v6 = vsub.f32 %v1306_v34, %v318_v48  ;;  %v329_v7 = vsub.f32 %v1306_v34, %v319_v54  ;;  %v330_v9 = vsub.f32 %v1306_v34, %v320_v55  ;;  %v1323_v45 = vld [vmem:[%s1278_s22 + $0x9] ss:$0 sm:$0xff]  ;;  %v392_v48 = vld [vmem:[#allocation3 + $0x288] sm:$0xff]  ;;  %v395_v54 = vld [vmem:[#allocation3 + $0x2a0] sm:$0xff] }
  0x3b   : > { %v331_v10 = vsub.f32 %v1306_v34, %v321_v56  ;;  %v332_v11 = vsub.f32 %v1306_v34, %v322_v63  ;;  %v333_v12 = vand.u32 2147483647, %v324_v57  ;;  %v309_v16 = vadd.f32 %v300_v53, %v270_v44  ;;  %v394_v53 = vld [vmem:[#allocation3 + $0x298] sm:$0xff]  ;;  %v397_v63 = vld [vmem:[#allocation3 + $0x2b0] sm:$0xff] }
  0x3c   : > { %v334_v17 = vand.u32 2147483647, %v325_v58  ;;  %v335_v18 = vand.u32 2147483647, %v326_v4  ;;  %v336_v19 = vand.u32 2147483647, %v327_v5  ;;  %v310_v21 = vadd.f32 %v301_v59, %v271_v49 }
  0x3d   : > { %v311_v22 = vadd.f32 %v302_v60, %v272_v52  ;;  %v337_v23 = vand.u32 2147483647, %v328_v6  ;;  %v338_v24 = vand.u32 2147483647, %v329_v7  ;;  %v339_v27 = vand.u32 2147483647, %v330_v9 }
  0x3e   : > { %v340_v28 = vand.u32 2147483647, %v331_v10  ;;  %v342_v29 = vadd.f32 %v333_v12, %v303_v61  ;;  %v363_v32 = vsub.f32 %v1192_v8, %v353_v13  ;;  %v341_v33 = vand.u32 2147483647, %v332_v11  ;;  %v393_v52 = vld [vmem:[#allocation3 + $0x290] sm:$0xff]  ;;  %v396_v59 = vld [vmem:[#allocation3 + $0x2a8] sm:$0xff] }
  0x3f   : > { %v343_v34 = vadd.f32 %v334_v17, %v304_v62  ;;  %v344_v36 = vadd.f32 %v335_v18, %v305_v0  ;;  %v345_v40 = vadd.f32 %v336_v19, %v306_v1  ;;  %v346_v42 = vadd.f32 %v337_v23, %v307_v2  ;;  %v398_v0 = vld [vmem:[#allocation3 + $0x2b8] sm:$0xff]  ;;  %v399_v1 = vld [vmem:[#allocation3 + $0x2c0] sm:$0xff]  ;;  %v400_v11 = vld [vmem:[#allocation3 + $0x2c8] sm:$0x3] }
  0x40   : > { %v347_v43 = vadd.f32 %v338_v24, %v308_v3  ;;  %v364_v35 = vsub.f32 %v1192_v8, %v354_v14  ;;  %v365_v44 = vsub.f32 %v1192_v8, %v355_v15  ;;  %v366_v46 = vsub.f32 %v1192_v8, %v356_v20 }
  0x41   : > { %v367_v37 = vsub.f32 %v1192_v8, %v357_v25  ;;  %v368_v38 = vsub.f32 %v1192_v8, %v358_v26  ;;  %v369_v47 = vsub.f32 %v1192_v8, %v359_v30  ;;  %v370_v49 = vsub.f32 %v1192_v8, %v360_v31  ;;  %v432_v26 = vld [vmem:[#allocation3 + $0x2d8] sm:$0xff] }
  0x42   : > { %v371_v50 = vsub.f32 %v1192_v8, %v361_v41  ;;  %v372_v39 = vand.u32 2147483647, %v363_v32  ;;  %v373_v51 = vand.u32 2147483647, %v364_v35  ;;  %v348_v55 = vadd.f32 %v339_v27, %v309_v16  ;;  %v1330_v16 = vld [vmem:[%s1278_s22 + $0xa] ss:$0 sm:$0xff] }
  0x43   : > { %v374_v56 = vand.u32 2147483647, %v365_v44  ;;  %v375_v57 = vand.u32 2147483647, %v366_v46  ;;  %v376_v58 = vand.u32 2147483647, %v367_v37  ;;  %v349_v60 = vadd.f32 %v340_v28, %v310_v21 }
  0x44   : > { %v350_v61 = vadd.f32 %v341_v33, %v311_v22  ;;  %v377_v62 = vand.u32 2147483647, %v368_v38  ;;  %v402_v2 = vsub.f32 %v1323_v45, %v392_v48  ;;  %v378_v3 = vand.u32 2147483647, %v369_v47  ;;  %v431_v21 = vld [vmem:[#allocation3 + $0x2d0] sm:$0xff]  ;;  %v433_v27 = vld [vmem:[#allocation3 + $0x2e0] sm:$0xff] }
  0x45   : > { %v379_v4 = vand.u32 2147483647, %v370_v49  ;;  %v380_v5 = vand.u32 2147483647, %v371_v50  ;;  %v381_v6 = vadd.f32 %v372_v39, %v342_v29  ;;  %v382_v7 = vadd.f32 %v373_v51, %v343_v34  ;;  %v434_v28 = vld [vmem:[#allocation3 + $0x2e8] sm:$0xff]  ;;  %v435_v29 = vld [vmem:[#allocation3 + $0x2f0] sm:$0xff] }
  0x46   : > { %v383_v8 = vadd.f32 %v374_v56, %v344_v36  ;;  %v384_v9 = vadd.f32 %v375_v57, %v345_v40  ;;  %v385_v10 = vadd.f32 %v376_v58, %v346_v42  ;;  %v386_v12 = vadd.f32 %v377_v62, %v347_v43  ;;  %v436_v34 = vld [vmem:[#allocation3 + $0x2f8] sm:$0xff]  ;;  %v437_v42 = vld [vmem:[#allocation3 + $0x300] sm:$0xff]  ;;  %v438_v43 = vld [vmem:[#allocation3 + $0x308] sm:$0xff] }
  0x47   : > { %v403_v13 = vsub.f32 %v1323_v45, %v393_v52  ;;  %v404_v14 = vsub.f32 %v1323_v45, %v394_v53  ;;  %v405_v15 = vsub.f32 %v1323_v45, %v395_v54  ;;  %v406_v17 = vsub.f32 %v1323_v45, %v396_v59  ;;  %v439_v35 = vld [vmem:[#allocation3 + $0x310] sm:$0x3]  ;;  %v1195_v54 = vld [vmem:[%s1278_s22 + $0xb] ss:$0 sm:$0xff] }
  0x48   : > { %v407_v18 = vsub.f32 %v1323_v45, %v397_v63  ;;  %v408_v19 = vsub.f32 %v1323_v45, %v398_v0  ;;  %v409_v20 = vsub.f32 %v1323_v45, %v399_v1  ;;  %v410_v22 = vsub.f32 %v1323_v45, %v400_v11  ;;  %v470_v59 = vld [vmem:[#allocation3 + $0x318] sm:$0xff]  ;;  %v472_v1 = vld [vmem:[#allocation3 + $0x328] sm:$0xff] }
  0x49   : > { %v411_v23 = vand.u32 2147483647, %v402_v2  ;;  %v412_v24 = vand.u32 2147483647, %v403_v13  ;;  %v413_v25 = vand.u32 2147483647, %v404_v14  ;;  %v387_v30 = vadd.f32 %v378_v3, %v348_v55 }
  0x4a   : > { %v414_v31 = vand.u32 2147483647, %v405_v15  ;;  %v415_v32 = vand.u32 2147483647, %v406_v17  ;;  %v416_v33 = vand.u32 2147483647, %v407_v18  ;;  %v388_v36 = vadd.f32 %v379_v4, %v349_v60 }
  0x4b   : > { %v389_v40 = vadd.f32 %v380_v5, %v350_v61  ;;  %v417_v41 = vand.u32 2147483647, %v408_v19  ;;  %v441_v44 = vsub.f32 %v1330_v16, %v431_v21  ;;  %v418_v45 = vand.u32 2147483647, %v409_v20  ;;  %v471_v60 = vld [vmem:[#allocation3 + $0x320] sm:$0xff]  ;;  %v473_v2 = vld [vmem:[#allocation3 + $0x330] sm:$0xff] }
  0x4c   : > { %v419_v46 = vand.u32 2147483647, %v410_v22  ;;  %v420_v37 = vadd.f32 %v411_v23, %v381_v6  ;;  %v421_v38 = vadd.f32 %v412_v24, %v382_v7  ;;  %v422_v47 = vadd.f32 %v413_v25, %v383_v8  ;;  %v474_v3 = vld [vmem:[#allocation3 + $0x338] sm:$0xff]  ;;  %v475_v4 = vld [vmem:[#allocation3 + $0x340] sm:$0xff]  ;;  %v476_v11 = vld [vmem:[#allocation3 + $0x348] sm:$0xff] }
  0x4d   : > { %v423_v48 = vadd.f32 %v414_v31, %v384_v9  ;;  %v424_v49 = vadd.f32 %v415_v32, %v385_v10  ;;  %v425_v50 = vadd.f32 %v416_v33, %v386_v12  ;;  %v442_v39 = vsub.f32 %v1330_v16, %v432_v26  ;;  %v477_v12 = vld [vmem:[#allocation3 + $0x350] sm:$0xff]  ;;  %v478_v13 = vld [vmem:[#allocation3 + $0x358] sm:$0x3]  ;;  %v509_v33 = vld [vmem:[#allocation3 + $0x360] sm:$0xff] }
  0x4e   : > { %v443_v51 = vsub.f32 %v1330_v16, %v433_v27  ;;  %v444_v52 = vsub.f32 %v1330_v16, %v434_v28  ;;  %v445_v53 = vsub.f32 %v1330_v16, %v435_v29  ;;  %v446_v55 = vsub.f32 %v1330_v16, %v436_v34  ;;  %v1196_v28 = vld [vmem:[%s1278_s22 + $0xc] ss:$0 sm:$0xff]  ;;  %v510_v34 = vld [vmem:[#allocation3 + $0x368] sm:$0xff] }
  0x4f   : > { %v447_v56 = vsub.f32 %v1330_v16, %v437_v42  ;;  %v448_v57 = vsub.f32 %v1330_v16, %v438_v43  ;;  %v449_v58 = vsub.f32 %v1330_v16, %v439_v35  ;;  %v426_v61 = vadd.f32 %v417_v41, %v387_v30  ;;  %v512_v35 = vld [vmem:[#allocation3 + $0x378] sm:$0xff] }
  0x50   : > { %v450_v62 = vand.u32 2147483647, %v441_v44  ;;  %v451_v63 = vand.u32 2147483647, %v442_v39  ;;  %v452_v0 = vand.u32 2147483647, %v443_v51  ;;  %v427_v5 = vadd.f32 %v418_v45, %v388_v36 }
  0x51   : > { %v453_v6 = vand.u32 2147483647, %v444_v52  ;;  %v454_v7 = vand.u32 2147483647, %v445_v53  ;;  %v455_v8 = vand.u32 2147483647, %v446_v55  ;;  %v428_v9 = vadd.f32 %v419_v46, %v389_v40 }
  0x52   : > { %v456_v10 = vand.u32 2147483647, %v447_v56  ;;  %v480_v14 = vsub.f32 %v1195_v54, %v470_v59  ;;  %v481_v15 = vsub.f32 %v1195_v54, %v471_v60  ;;  %v457_v16 = vand.u32 2147483647, %v448_v57  ;;  %v511_v36 = vld [vmem:[#allocation3 + $0x370] sm:$0xff]  ;;  %v513_v44 = vld [vmem:[#allocation3 + $0x380] sm:$0xff] }
  0x53   : > { %v458_v17 = vand.u32 2147483647, %v449_v58  ;;  %v459_v18 = vadd.f32 %v450_v62, %v420_v37  ;;  %v460_v19 = vadd.f32 %v451_v63, %v421_v38  ;;  %v461_v20 = vadd.f32 %v452_v0, %v422_v47  ;;  %v514_v47 = vld [vmem:[#allocation3 + $0x388] sm:$0xff]  ;;  %v516_v56 = vld [vmem:[#allocation3 + $0x398] sm:$0xff]  ;;  %v517_v57 = vld [vmem:[#allocation3 + $0x3a0] sm:$0x3] }
  0x54   : > { %v462_v21 = vadd.f32 %v453_v6, %v423_v48  ;;  %v463_v22 = vadd.f32 %v454_v7, %v424_v49  ;;  %v464_v23 = vadd.f32 %v455_v8, %v425_v50  ;;  %v482_v24 = vsub.f32 %v1195_v54, %v472_v1  ;;  %v515_v48 = vld [vmem:[#allocation3 + $0x390] sm:$0xff] }
  0x55   : > { %v483_v25 = vsub.f32 %v1195_v54, %v473_v2  ;;  %v484_v26 = vsub.f32 %v1195_v54, %v474_v3  ;;  %v485_v27 = vsub.f32 %v1195_v54, %v475_v4  ;;  %v486_v29 = vsub.f32 %v1195_v54, %v476_v11  ;;  %v548_v2 = vld [vmem:[#allocation3 + $0x3a8] sm:$0xff]  ;;  %v1197_v3 = vld [vmem:[%s1278_s22 + $0xd] ss:$0 sm:$0xff]  ;;  %v549_v8 = vld [vmem:[#allocation3 + $0x3b0] sm:$0xff] }
  0x56   : > { %v487_v30 = vsub.f32 %v1195_v54, %v477_v12  ;;  %v488_v31 = vsub.f32 %v1195_v54, %v478_v13  ;;  %v489_v32 = vand.u32 2147483647, %v480_v14  ;;  %v465_v40 = vadd.f32 %v456_v10, %v426_v61  ;;  %v551_v10 = vld [vmem:[#allocation3 + $0x3c0] sm:$0xff] }
  0x57   : > { %v490_v41 = vand.u32 2147483647, %v481_v15  ;;  %v491_v42 = vand.u32 2147483647, %v482_v24  ;;  %v492_v43 = vand.u32 2147483647, %v483_v25  ;;  %v466_v45 = vadd.f32 %v457_v16, %v427_v5 }
  0x58   : > { %v467_v46 = vadd.f32 %v458_v17, %v428_v9  ;;  %v493_v37 = vand.u32 2147483647, %v484_v26  ;;  %v494_v38 = vand.u32 2147483647, %v485_v27  ;;  %v495_v49 = vand.u32 2147483647, %v486_v29 }
  0x59   : > { %v496_v50 = vand.u32 2147483647, %v487_v30  ;;  %v498_v39 = vadd.f32 %v489_v32, %v459_v18  ;;  %v519_v51 = vsub.f32 %v1196_v28, %v509_v33  ;;  %v497_v52 = vand.u32 2147483647, %v488_v31  ;;  %v550_v9 = vld [vmem:[#allocation3 + $0x3b8] sm:$0xff]  ;;  %v552_v15 = vld [vmem:[#allocation3 + $0x3c8] sm:$0xff] }
  0x5a   : > { %v499_v53 = vadd.f32 %v490_v41, %v460_v19  ;;  %v500_v54 = vadd.f32 %v491_v42, %v461_v20  ;;  %v501_v55 = vadd.f32 %v492_v43, %v462_v21  ;;  %v502_v58 = vadd.f32 %v493_v37, %v463_v22  ;;  %v553_v16 = vld [vmem:[#allocation3 + $0x3d0] sm:$0xff]  ;;  %v554_v21 = vld [vmem:[#allocation3 + $0x3d8] sm:$0xff]  ;;  %v555_v22 = vld [vmem:[#allocation3 + $0x3e0] sm:$0xff] }
  0x5b   : > { %v503_v59 = vadd.f32 %v494_v38, %v464_v23  ;;  %v520_v60 = vsub.f32 %v1196_v28, %v510_v34  ;;  %v521_v61 = vsub.f32 %v1196_v28, %v511_v36  ;;  %v522_v62 = vsub.f32 %v1196_v28, %v512_v35  ;;  %v556_v31 = vld [vmem:[#allocation3 + $0x3e8] sm:$0x3] }
  0x5c   : > { %v523_v63 = vsub.f32 %v1196_v28, %v513_v44  ;;  %v524_v0 = vsub.f32 %v1196_v28, %v514_v47  ;;  %v525_v1 = vsub.f32 %v1196_v28, %v515_v48  ;;  %v526_v4 = vsub.f32 %v1196_v28, %v516_v56  ;;  %v587_v44 = vld [vmem:[#allocation3 + $0x3f0] sm:$0xff]  ;;  %v588_v47 = vld [vmem:[#allocation3 + $0x3f8] sm:$0xff]  ;;  %v589_v48 = vld [vmem:[#allocation3 + $0x400] sm:$0xff] }
  0x5d   : > { %v527_v5 = vsub.f32 %v1196_v28, %v517_v57  ;;  %v528_v6 = vand.u32 2147483647, %v519_v51  ;;  %v529_v7 = vand.u32 2147483647, %v520_v60  ;;  %v504_v11 = vadd.f32 %v495_v49, %v465_v40  ;;  %v1350_v40 = vld [vmem:[%s1278_s22 + $0xe] ss:$0 sm:$0xff] }
  0x5e   : > { %v530_v12 = vand.u32 2147483647, %v521_v61  ;;  %v531_v13 = vand.u32 2147483647, %v522_v62  ;;  %v532_v14 = vand.u32 2147483647, %v523_v63  ;;  %v505_v17 = vadd.f32 %v496_v50, %v466_v45 }
  0x5f   : > { %v506_v18 = vadd.f32 %v497_v52, %v467_v46  ;;  %v533_v19 = vand.u32 2147483647, %v524_v0  ;;  %v534_v20 = vand.u32 2147483647, %v525_v1  ;;  %v535_v23 = vand.u32 2147483647, %v526_v4 }
  0x60   : > { %v536_v24 = vand.u32 2147483647, %v527_v5  ;;  %v537_v25 = vadd.f32 %v528_v6, %v498_v39  ;;  %v558_v26 = vsub.f32 %v1197_v3, %v548_v2  ;;  %v538_v27 = vadd.f32 %v529_v7, %v499_v53  ;;  %v590_v49 = vld [vmem:[#allocation3 + $0x408] sm:$0xff]  ;;  %v591_v50 = vld [vmem:[#allocation3 + $0x410] sm:$0xff]  ;;  %v592_v57 = vld [vmem:[#allocation3 + $0x418] sm:$0xff] }
  0x61   : > { %v539_v28 = vadd.f32 %v530_v12, %v500_v54  ;;  %v540_v29 = vadd.f32 %v531_v13, %v501_v55  ;;  %v541_v30 = vadd.f32 %v532_v14, %v502_v58  ;;  %v542_v32 = vadd.f32 %v533_v19, %v503_v59  ;;  %v593_v58 = vld [vmem:[#allocation3 + $0x420] sm:$0xff]  ;;  %v594_v59 = vld [vmem:[#allocation3 + $0x428] sm:$0xff]  ;;  %v595_v1 = vld [vmem:[#allocation3 + $0x430] sm:$0x3] }
  0x62   : > { %v559_v33 = vsub.f32 %v1197_v3, %v549_v8  ;;  %v560_v34 = vsub.f32 %v1197_v3, %v550_v9  ;;  %v561_v36 = vsub.f32 %v1197_v3, %v551_v10  ;;  %v562_v41 = vsub.f32 %v1197_v3, %v552_v15  ;;  %v1199_v10 = vld [vmem:[%s1278_s22 + $0xf] ss:$0 sm:$0xff] }
  0x63   : > { %v563_v42 = vsub.f32 %v1197_v3, %v553_v16  ;;  %v564_v43 = vsub.f32 %v1197_v3, %v554_v21  ;;  %v565_v35 = vsub.f32 %v1197_v3, %v555_v22  ;;  %v566_v45 = vsub.f32 %v1197_v3, %v556_v31  ;;  %v626_v15 = vld [vmem:[#allocation3 + $0x438] sm:$0xff]  ;;  %v627_v16 = vld [vmem:[#allocation3 + $0x440] sm:$0xff]  ;;  %v628_v21 = vld [vmem:[#allocation3 + $0x448] sm:$0xff] }
  0x64   : > { %v567_v46 = vand.u32 2147483647, %v558_v26  ;;  %v568_v37 = vand.u32 2147483647, %v559_v33  ;;  %v569_v38 = vand.u32 2147483647, %v560_v34  ;;  %v543_v39 = vadd.f32 %v534_v20, %v504_v11 }
  0x65   : > { %v570_v51 = vand.u32 2147483647, %v561_v36  ;;  %v571_v52 = vand.u32 2147483647, %v562_v41  ;;  %v572_v53 = vand.u32 2147483647, %v563_v42  ;;  %v544_v54 = vadd.f32 %v535_v23, %v505_v17 }
  0x66   : > { %v545_v55 = vadd.f32 %v536_v24, %v506_v18  ;;  %v573_v56 = vand.u32 2147483647, %v564_v43  ;;  %v597_v60 = vsub.f32 %v1350_v40, %v587_v44  ;;  %v574_v61 = vand.u32 2147483647, %v565_v35  ;;  %v629_v22 = vld [vmem:[#allocation3 + $0x450] sm:$0xff]  ;;  %v630_v23 = vld [vmem:[#allocation3 + $0x458] sm:$0xff] }
  0x67   : > { %v575_v62 = vand.u32 2147483647, %v566_v45  ;;  %v576_v63 = vadd.f32 %v567_v46, %v537_v25  ;;  %v577_v0 = vadd.f32 %v568_v37, %v538_v27  ;;  %v578_v2 = vadd.f32 %v569_v38, %v539_v28  ;;  %v632_v31 = vld [vmem:[#allocation3 + $0x468] sm:$0xff]  ;;  %v634_v43 = vld [vmem:[#allocation3 + $0x478] sm:$0x3] }
  0x68   : > { %v579_v3 = vadd.f32 %v570_v51, %v540_v29  ;;  %v580_v4 = vadd.f32 %v571_v52, %v541_v30  ;;  %v581_v5 = vadd.f32 %v572_v53, %v542_v32  ;;  %v598_v6 = vsub.f32 %v1350_v40, %v588_v47  ;;  %v631_v30 = vld [vmem:[#allocation3 + $0x460] sm:$0xff]  ;;  %v633_v32 = vld [vmem:[#allocation3 + $0x470] sm:$0xff] }
  0x69   : > { %v599_v7 = vsub.f32 %v1350_v40, %v589_v48  ;;  %v600_v8 = vsub.f32 %v1350_v40, %v590_v49  ;;  %v601_v9 = vsub.f32 %v1350_v40, %v591_v50  ;;  %v602_v11 = vsub.f32 %v1350_v40, %v592_v57  ;;  %v665_v49 = vld [vmem:[#allocation3 + $0x480] sm:$0xff] }
  0x6a   : > { %v603_v12 = vsub.f32 %v1350_v40, %v593_v58  ;;  %v604_v13 = vsub.f32 %v1350_v40, %v594_v59  ;;  %v605_v14 = vsub.f32 %v1350_v40, %v595_v1  ;;  %v582_v17 = vadd.f32 %v573_v56, %v543_v39  ;;  %v1200_v50 = vld [vmem:[%s1278_s22 + $0x10] ss:$0 sm:$0xff] }
  0x6b   : > { %v606_v18 = vand.u32 2147483647, %v597_v60  ;;  %v607_v19 = vand.u32 2147483647, %v598_v6  ;;  %v608_v20 = vand.u32 2147483647, %v599_v7  ;;  %v583_v24 = vadd.f32 %v574_v61, %v544_v54 }
  0x6c   : > { %v609_v25 = vand.u32 2147483647, %v600_v8  ;;  %v610_v26 = vand.u32 2147483647, %v601_v9  ;;  %v611_v27 = vand.u32 2147483647, %v602_v11  ;;  %v584_v28 = vadd.f32 %v575_v62, %v545_v55 }
  0x6d   : > { %v612_v29 = vand.u32 2147483647, %v603_v12  ;;  %v636_v33 = vsub.f32 %v1199_v10, %v626_v15  ;;  %v637_v34 = vsub.f32 %v1199_v10, %v627_v16  ;;  %v613_v36 = vand.u32 2147483647, %v604_v13  ;;  %v666_v54 = vld [vmem:[#allocation3 + $0x488] sm:$0xff]  ;;  %v667_v55 = vld [vmem:[#allocation3 + $0x490] sm:$0xff] }
  0x6e   : > { %v614_v40 = vand.u32 2147483647, %v605_v14  ;;  %v615_v41 = vadd.f32 %v606_v18, %v576_v63  ;;  %v616_v42 = vadd.f32 %v607_v19, %v577_v0  ;;  %v617_v35 = vadd.f32 %v608_v20, %v578_v2  ;;  %v668_v0 = vld [vmem:[#allocation3 + $0x498] sm:$0xff]  ;;  %v669_v1 = vld [vmem:[#allocation3 + $0x4a0] sm:$0xff]  ;;  %v671_v6 = vld [vmem:[#allocation3 + $0x4b0] sm:$0xff] }
  0x6f   : > { %v618_v44 = vadd.f32 %v609_v25, %v579_v3  ;;  %v619_v45 = vadd.f32 %v610_v26, %v580_v4  ;;  %v620_v46 = vadd.f32 %v611_v27, %v581_v5  ;;  %v638_v37 = vsub.f32 %v1199_v10, %v628_v21  ;;  %v670_v5 = vld [vmem:[#allocation3 + $0x4a8] sm:$0xff]  ;;  %v672_v12 = vld [vmem:[#allocation3 + $0x4b8] sm:$0xff]  ;;  %v673_v13 = vld [vmem:[#allocation3 + $0x4c0] sm:$0x3] }
  0x70   : > { %v639_v38 = vsub.f32 %v1199_v10, %v629_v22  ;;  %v640_v47 = vsub.f32 %v1199_v10, %v630_v23  ;;  %v641_v48 = vsub.f32 %v1199_v10, %v631_v30  ;;  %v642_v39 = vsub.f32 %v1199_v10, %v632_v31  ;;  %v1364_v18 = vld [vmem:[%s1278_s22 + $0x11] ss:$0 sm:$0xff]  ;;  %v704_v23 = vld [vmem:[#allocation3 + $0x4c8] sm:$0xff] }
  0x71   : > { %v643_v51 = vsub.f32 %v1199_v10, %v633_v32  ;;  %v644_v52 = vsub.f32 %v1199_v10, %v634_v43  ;;  %v645_v53 = vand.u32 2147483647, %v636_v33  ;;  %v621_v56 = vadd.f32 %v612_v29, %v582_v17  ;;  %v706_v29 = vld [vmem:[#allocation3 + $0x4d8] sm:$0xff]  ;;  %v707_v30 = vld [vmem:[#allocation3 + $0x4e0] sm:$0xff]  ;;  %v709_v43 = vld [vmem:[#allocation3 + $0x4f0] sm:$0xff] }
  0x72   : > { %v646_v57 = vand.u32 2147483647, %v637_v34  ;;  %v647_v58 = vand.u32 2147483647, %v638_v37  ;;  %v648_v59 = vand.u32 2147483647, %v639_v38  ;;  %v622_v60 = vadd.f32 %v613_v36, %v583_v24 }
  0x73   : > { %v623_v61 = vadd.f32 %v614_v40, %v584_v28  ;;  %v649_v62 = vand.u32 2147483647, %v640_v47  ;;  %v650_v63 = vand.u32 2147483647, %v641_v48  ;;  %v651_v2 = vand.u32 2147483647, %v642_v39 }
  0x74   : > { %v652_v3 = vand.u32 2147483647, %v643_v51  ;;  %v654_v4 = vadd.f32 %v645_v53, %v615_v41  ;;  %v675_v7 = vsub.f32 %v1200_v50, %v665_v49  ;;  %v653_v8 = vand.u32 2147483647, %v644_v52  ;;  %v705_v28 = vld [vmem:[#allocation3 + $0x4d0] sm:$0xff]  ;;  %v708_v36 = vld [vmem:[#allocation3 + $0x4e8] sm:$0xff] }
  0x75   : > { %v655_v9 = vadd.f32 %v646_v57, %v616_v42  ;;  %v656_v10 = vadd.f32 %v647_v58, %v617_v35  ;;  %v657_v11 = vadd.f32 %v648_v59, %v618_v44  ;;  %v658_v14 = vadd.f32 %v649_v62, %v619_v45  ;;  %v710_v35 = vld [vmem:[#allocation3 + $0x4f8] sm:$0xff]  ;;  %v711_v44 = vld [vmem:[#allocation3 + $0x500] sm:$0xff]  ;;  %v712_v51 = vld [vmem:[#allocation3 + $0x508] sm:$0x3] }
  0x76   : > { %v659_v15 = vadd.f32 %v650_v63, %v620_v46  ;;  %v676_v16 = vsub.f32 %v1200_v50, %v666_v54  ;;  %v677_v17 = vsub.f32 %v1200_v50, %v667_v55  ;;  %v678_v19 = vsub.f32 %v1200_v50, %v668_v0 }
  0x77   : > { %v679_v20 = vsub.f32 %v1200_v50, %v669_v1  ;;  %v680_v21 = vsub.f32 %v1200_v50, %v670_v5  ;;  %v681_v22 = vsub.f32 %v1200_v50, %v671_v6  ;;  %v682_v24 = vsub.f32 %v1200_v50, %v672_v12  ;;  %v747_v5 = vld [vmem:[#allocation3 + $0x530] sm:$0xff] }
  0x78   : > { %v683_v25 = vsub.f32 %v1200_v50, %v673_v13  ;;  %v684_v26 = vand.u32 2147483647, %v675_v7  ;;  %v685_v27 = vand.u32 2147483647, %v676_v16  ;;  %v660_v31 = vadd.f32 %v651_v2, %v621_v56  ;;  %v1371_v56 = vld [vmem:[%s1278_s22 + $0x12] ss:$0 sm:$0xff] }
  0x79   : > { %v686_v32 = vand.u32 2147483647, %v677_v17  ;;  %v687_v33 = vand.u32 2147483647, %v678_v19  ;;  %v688_v34 = vand.u32 2147483647, %v679_v20  ;;  %v661_v40 = vadd.f32 %v652_v3, %v622_v60 }
  0x7a   : > { %v662_v41 = vadd.f32 %v653_v8, %v623_v61  ;;  %v689_v42 = vand.u32 2147483647, %v680_v21  ;;  %v714_v45 = vsub.f32 %v1364_v18, %v704_v23  ;;  %v690_v46 = vand.u32 2147483647, %v681_v22  ;;  %v743_v61 = vld [vmem:[#allocation3 + $0x510] sm:$0xff]  ;;  %v744_v2 = vld [vmem:[#allocation3 + $0x518] sm:$0xff] }
  0x7b   : > { %v691_v37 = vand.u32 2147483647, %v682_v24  ;;  %v692_v38 = vand.u32 2147483647, %v683_v25  ;;  %v693_v47 = vadd.f32 %v684_v26, %v654_v4  ;;  %v694_v48 = vadd.f32 %v685_v27, %v655_v9  ;;  %v745_v3 = vld [vmem:[#allocation3 + $0x520] sm:$0xff]  ;;  %v746_v4 = vld [vmem:[#allocation3 + $0x528] sm:$0xff] }
  0x7c   : > { %v695_v49 = vadd.f32 %v686_v32, %v656_v10  ;;  %v696_v50 = vadd.f32 %v687_v33, %v657_v11  ;;  %v697_v39 = vadd.f32 %v688_v34, %v658_v14  ;;  %v698_v52 = vadd.f32 %v689_v42, %v659_v15  ;;  %v748_v13 = vld [vmem:[#allocation3 + $0x538] sm:$0xff]  ;;  %v749_v14 = vld [vmem:[#allocation3 + $0x540] sm:$0xff]  ;;  %v750_v15 = vld [vmem:[#allocation3 + $0x548] sm:$0xff] }
  0x7d   : > { %v715_v53 = vsub.f32 %v1364_v18, %v705_v28  ;;  %v716_v54 = vsub.f32 %v1364_v18, %v706_v29  ;;  %v717_v55 = vsub.f32 %v1364_v18, %v707_v30  ;;  %v718_v57 = vsub.f32 %v1364_v18, %v708_v36  ;;  %v751_v21 = vld [vmem:[#allocation3 + $0x550] sm:$0x3]  ;;  %v1384_v30 = vld [vmem:[%s1278_s22 + $0x13] ss:$0 sm:$0xff]  ;;  %v782_v36 = vld [vmem:[#allocation3 + $0x558] sm:$0xff] }
  0x7e   : > { %v719_v58 = vsub.f32 %v1364_v18, %v709_v43  ;;  %v720_v59 = vsub.f32 %v1364_v18, %v710_v35  ;;  %v721_v60 = vsub.f32 %v1364_v18, %v711_v44  ;;  %v722_v62 = vsub.f32 %v1364_v18, %v712_v51  ;;  %v784_v44 = vld [vmem:[#allocation3 + $0x568] sm:$0xff] }
  0x7f   : > { %v723_v63 = vand.u32 2147483647, %v714_v45  ;;  %v724_v0 = vand.u32 2147483647, %v715_v53  ;;  %v725_v1 = vand.u32 2147483647, %v716_v54  ;;  %v699_v6 = vadd.f32 %v690_v46, %v660_v31 }
  0x80   : > { %v726_v7 = vand.u32 2147483647, %v717_v55  ;;  %v727_v8 = vand.u32 2147483647, %v718_v57  ;;  %v728_v9 = vand.u32 2147483647, %v719_v58  ;;  %v700_v10 = vadd.f32 %v691_v37, %v661_v40 }
  0x81   : > { %v701_v11 = vadd.f32 %v692_v38, %v662_v41  ;;  %v729_v12 = vand.u32 2147483647, %v720_v59  ;;  %v753_v16 = vsub.f32 %v1371_v56, %v743_v61  ;;  %v730_v17 = vand.u32 2147483647, %v721_v60  ;;  %v783_v40 = vld [vmem:[#allocation3 + $0x560] sm:$0xff]  ;;  %v785_v45 = vld [vmem:[#allocation3 + $0x570] sm:$0xff] }
  0x82   : > { %v731_v18 = vand.u32 2147483647, %v722_v62  ;;  %v732_v19 = vadd.f32 %v723_v63, %v693_v47  ;;  %v733_v20 = vadd.f32 %v724_v0, %v694_v48  ;;  %v734_v22 = vadd.f32 %v725_v1, %v695_v49  ;;  %v786_v46 = vld [vmem:[#allocation3 + $0x578] sm:$0xff]  ;;  %v788_v51 = vld [vmem:[#allocation3 + $0x588] sm:$0xff] }
  0x83   : > { %v735_v23 = vadd.f32 %v726_v7, %v696_v50  ;;  %v736_v24 = vadd.f32 %v727_v8, %v697_v39  ;;  %v737_v25 = vadd.f32 %v728_v9, %v698_v52  ;;  %v754_v26 = vsub.f32 %v1371_v56, %v744_v2  ;;  %v787_v39 = vld [vmem:[#allocation3 + $0x580] sm:$0xff]  ;;  %v789_v52 = vld [vmem:[#allocation3 + $0x590] sm:$0xff]  ;;  %v790_v59 = vld [vmem:[#allocation3 + $0x598] sm:$0x3] }
  0x84   : > { %v755_v27 = vsub.f32 %v1371_v56, %v745_v3  ;;  %v756_v28 = vsub.f32 %v1371_v56, %v746_v4  ;;  %v757_v29 = vsub.f32 %v1371_v56, %v747_v5  ;;  %v758_v31 = vsub.f32 %v1371_v56, %v748_v13  ;;  %v1204_v4 = vld [vmem:[%s1278_s22 + $0x14] ss:$0 sm:$0xff] }
  0x85   : > { %v759_v32 = vsub.f32 %v1371_v56, %v749_v14  ;;  %v760_v33 = vsub.f32 %v1371_v56, %v750_v15  ;;  %v761_v34 = vsub.f32 %v1371_v56, %v751_v21  ;;  %v738_v41 = vadd.f32 %v729_v12, %v699_v6  ;;  %v821_v9 = vld [vmem:[#allocation3 + $0x5a0] sm:$0xff] }
  0x86   : > { %v762_v42 = vand.u32 2147483647, %v753_v16  ;;  %v763_v43 = vand.u32 2147483647, %v754_v26  ;;  %v764_v35 = vand.u32 2147483647, %v755_v27  ;;  %v739_v37 = vadd.f32 %v730_v17, %v700_v10 }
  0x87   : > { %v765_v38 = vand.u32 2147483647, %v756_v28  ;;  %v766_v47 = vand.u32 2147483647, %v757_v29  ;;  %v767_v48 = vand.u32 2147483647, %v758_v31  ;;  %v740_v49 = vadd.f32 %v731_v18, %v701_v11 }
  0x88   : > { %v768_v50 = vand.u32 2147483647, %v759_v32  ;;  %v792_v53 = vsub.f32 %v1384_v30, %v782_v36  ;;  %v793_v54 = vsub.f32 %v1384_v30, %v783_v40  ;;  %v769_v55 = vand.u32 2147483647, %v760_v33  ;;  %v822_v10 = vld [vmem:[#allocation3 + $0x5a8] sm:$0xff]  ;;  %v823_v11 = vld [vmem:[#allocation3 + $0x5b0] sm:$0xff] }
  0x89   : > { %v770_v56 = vand.u32 2147483647, %v761_v34  ;;  %v771_v57 = vadd.f32 %v762_v42, %v732_v19  ;;  %v772_v58 = vadd.f32 %v763_v43, %v733_v20  ;;  %v773_v60 = vadd.f32 %v764_v35, %v734_v22  ;;  %v824_v16 = vld [vmem:[#allocation3 + $0x5b8] sm:$0xff]  ;;  %v825_v21 = vld [vmem:[#allocation3 + $0x5c0] sm:$0xff]  ;;  %v826_v22 = vld [vmem:[#allocation3 + $0x5c8] sm:$0xff] }
  0x8a   : > { %v774_v61 = vadd.f32 %v765_v38, %v735_v23  ;;  %v775_v62 = vadd.f32 %v766_v47, %v736_v24  ;;  %v776_v63 = vadd.f32 %v767_v48, %v737_v25  ;;  %v794_v0 = vsub.f32 %v1384_v30, %v784_v44  ;;  %v827_v26 = vld [vmem:[#allocation3 + $0x5d0] sm:$0xff]  ;;  %v828_v27 = vld [vmem:[#allocation3 + $0x5d8] sm:$0xff]  ;;  %v829_v33 = vld [vmem:[#allocation3 + $0x5e0] sm:$0x3] }
  0x8b   : > { %v795_v1 = vsub.f32 %v1384_v30, %v785_v45  ;;  %v796_v2 = vsub.f32 %v1384_v30, %v786_v46  ;;  %v797_v3 = vsub.f32 %v1384_v30, %v787_v39  ;;  %v798_v5 = vsub.f32 %v1384_v30, %v788_v51  ;;  %v1401_v42 = vld [vmem:[%s1278_s22 + $0x15] ss:$0 sm:$0xff]  ;;  %v860_v46 = vld [vmem:[#allocation3 + $0x5e8] sm:$0xff] }
  0x8c   : > { %v799_v6 = vsub.f32 %v1384_v30, %v789_v52  ;;  %v800_v7 = vsub.f32 %v1384_v30, %v790_v59  ;;  %v801_v8 = vand.u32 2147483647, %v792_v53  ;;  %v777_v12 = vadd.f32 %v768_v50, %v738_v41  ;;  %v862_v50 = vld [vmem:[#allocation3 + $0x5f8] sm:$0xff]  ;;  %v863_v39 = vld [vmem:[#allocation3 + $0x600] sm:$0xff]  ;;  %v865_v59 = vld [vmem:[#allocation3 + $0x610] sm:$0xff] }
  0x8d   : > { %v802_v13 = vand.u32 2147483647, %v793_v54  ;;  %v803_v14 = vand.u32 2147483647, %v794_v0  ;;  %v804_v15 = vand.u32 2147483647, %v795_v1  ;;  %v778_v17 = vadd.f32 %v769_v55, %v739_v37 }
  0x8e   : > { %v779_v18 = vadd.f32 %v770_v56, %v740_v49  ;;  %v805_v19 = vand.u32 2147483647, %v796_v2  ;;  %v806_v20 = vand.u32 2147483647, %v797_v3  ;;  %v807_v23 = vand.u32 2147483647, %v798_v5 }
  0x8f   : > { %v808_v24 = vand.u32 2147483647, %v799_v6  ;;  %v810_v25 = vadd.f32 %v801_v8, %v771_v57  ;;  %v831_v28 = vsub.f32 %v1204_v4, %v821_v9  ;;  %v809_v29 = vand.u32 2147483647, %v800_v7  ;;  %v861_v49 = vld [vmem:[#allocation3 + $0x5f0] sm:$0xff]  ;;  %v864_v55 = vld [vmem:[#allocation3 + $0x608] sm:$0xff] }
  0x90   : > { %v811_v30 = vadd.f32 %v802_v13, %v772_v58  ;;  %v812_v31 = vadd.f32 %v803_v14, %v773_v60  ;;  %v813_v32 = vadd.f32 %v804_v15, %v774_v61  ;;  %v814_v34 = vadd.f32 %v805_v19, %v775_v62  ;;  %v866_v60 = vld [vmem:[#allocation3 + $0x618] sm:$0xff]  ;;  %v867_v61 = vld [vmem:[#allocation3 + $0x620] sm:$0xff]  ;;  %v868_v7 = vld [vmem:[#allocation3 + $0x628] sm:$0x3] }
  0x91   : > { %v815_v36 = vadd.f32 %v806_v20, %v776_v63  ;;  %v832_v40 = vsub.f32 %v1204_v4, %v822_v10  ;;  %v833_v41 = vsub.f32 %v1204_v4, %v823_v11  ;;  %v834_v43 = vsub.f32 %v1204_v4, %v824_v16 }
  0x92   : > { %v835_v35 = vsub.f32 %v1204_v4, %v825_v21  ;;  %v836_v44 = vsub.f32 %v1204_v4, %v826_v22  ;;  %v837_v45 = vsub.f32 %v1204_v4, %v827_v26  ;;  %v838_v37 = vsub.f32 %v1204_v4, %v828_v27  ;;  %v900_v22 = vld [vmem:[#allocation3 + $0x638] sm:$0xff] }
  0x93   : > { %v839_v38 = vsub.f32 %v1204_v4, %v829_v33  ;;  %v840_v47 = vand.u32 2147483647, %v831_v28  ;;  %v841_v48 = vand.u32 2147483647, %v832_v40  ;;  %v816_v51 = vadd.f32 %v807_v23, %v777_v12  ;;  %v1408_v12 = vld [vmem:[%s1278_s22 + $0x16] ss:$0 sm:$0xff] }
  0x94   : > { %v842_v52 = vand.u32 2147483647, %v833_v41  ;;  %v843_v53 = vand.u32 2147483647, %v834_v43  ;;  %v844_v54 = vand.u32 2147483647, %v835_v35  ;;  %v817_v56 = vadd.f32 %v808_v24, %v778_v17 }
  0x95   : > { %v818_v57 = vadd.f32 %v809_v29, %v779_v18  ;;  %v845_v58 = vand.u32 2147483647, %v836_v44  ;;  %v870_v62 = vsub.f32 %v1401_v42, %v860_v46  ;;  %v846_v63 = vand.u32 2147483647, %v837_v45  ;;  %v899_v17 = vld [vmem:[#allocation3 + $0x630] sm:$0xff]  ;;  %v901_v23 = vld [vmem:[#allocation3 + $0x640] sm:$0xff] }
  0x96   : > { %v847_v0 = vand.u32 2147483647, %v838_v37  ;;  %v848_v1 = vand.u32 2147483647, %v839_v38  ;;  %v849_v2 = vadd.f32 %v840_v47, %v810_v25  ;;  %v850_v3 = vadd.f32 %v841_v48, %v811_v30  ;;  %v902_v24 = vld [vmem:[#allocation3 + $0x648] sm:$0xff]  ;;  %v903_v25 = vld [vmem:[#allocation3 + $0x650] sm:$0xff] }
  0x97   : > { %v851_v4 = vadd.f32 %v842_v52, %v812_v31  ;;  %v852_v5 = vadd.f32 %v843_v53, %v813_v32  ;;  %v853_v6 = vadd.f32 %v844_v54, %v814_v34  ;;  %v854_v8 = vadd.f32 %v845_v58, %v815_v36  ;;  %v904_v33 = vld [vmem:[#allocation3 + $0x658] sm:$0xff]  ;;  %v905_v34 = vld [vmem:[#allocation3 + $0x660] sm:$0xff]  ;;  %v906_v36 = vld [vmem:[#allocation3 + $0x668] sm:$0xff] }
  0x98   : > { %v871_v9 = vsub.f32 %v1401_v42, %v861_v49  ;;  %v872_v10 = vsub.f32 %v1401_v42, %v862_v50  ;;  %v873_v11 = vsub.f32 %v1401_v42, %v863_v39  ;;  %v874_v13 = vsub.f32 %v1401_v42, %v864_v55  ;;  %v907_v44 = vld [vmem:[#allocation3 + $0x670] sm:$0x3]  ;;  %v1207_v39 = vld [vmem:[%s1278_s22 + $0x17] ss:$0 sm:$0xff]  ;;  %v938_v55 = vld [vmem:[#allocation3 + $0x678] sm:$0xff] }
  0x99   : > { %v875_v14 = vsub.f32 %v1401_v42, %v865_v59  ;;  %v876_v15 = vsub.f32 %v1401_v42, %v866_v60  ;;  %v877_v16 = vsub.f32 %v1401_v42, %v867_v61  ;;  %v878_v18 = vsub.f32 %v1401_v42, %v868_v7  ;;  %v940_v61 = vld [vmem:[#allocation3 + $0x688] sm:$0xff] }
  0x9a   : > { %v879_v19 = vand.u32 2147483647, %v870_v62  ;;  %v880_v20 = vand.u32 2147483647, %v871_v9  ;;  %v881_v21 = vand.u32 2147483647, %v872_v10  ;;  %v855_v26 = vadd.f32 %v846_v63, %v816_v51 }
  0x9b   : > { %v882_v27 = vand.u32 2147483647, %v873_v11  ;;  %v883_v28 = vand.u32 2147483647, %v874_v13  ;;  %v884_v29 = vand.u32 2147483647, %v875_v14  ;;  %v856_v30 = vadd.f32 %v847_v0, %v817_v56 }
  0x9c   : > { %v857_v31 = vadd.f32 %v848_v1, %v818_v57  ;;  %v885_v32 = vand.u32 2147483647, %v876_v15  ;;  %v909_v40 = vsub.f32 %v1408_v12, %v899_v17  ;;  %v886_v41 = vand.u32 2147483647, %v877_v16  ;;  %v939_v56 = vld [vmem:[#allocation3 + $0x680] sm:$0xff]  ;;  %v941_v62 = vld [vmem:[#allocation3 + $0x690] sm:$0xff] }
  0x9d   : > { %v887_v42 = vand.u32 2147483647, %v878_v18  ;;  %v888_v43 = vadd.f32 %v879_v19, %v849_v2  ;;  %v889_v35 = vadd.f32 %v880_v20, %v850_v3  ;;  %v890_v45 = vadd.f32 %v881_v21, %v851_v4  ;;  %v942_v63 = vld [vmem:[#allocation3 + $0x698] sm:$0xff]  ;;  %v944_v7 = vld [vmem:[#allocation3 + $0x6a8] sm:$0xff] }
  0x9e   : > { %v891_v46 = vadd.f32 %v882_v27, %v852_v5  ;;  %v892_v37 = vadd.f32 %v883_v28, %v853_v6  ;;  %v893_v38 = vadd.f32 %v884_v29, %v854_v8  ;;  %v910_v47 = vsub.f32 %v1408_v12, %v900_v22  ;;  %v943_v6 = vld [vmem:[#allocation3 + $0x6a0] sm:$0xff]  ;;  %v945_v8 = vld [vmem:[#allocation3 + $0x6b0] sm:$0xff]  ;;  %v946_v15 = vld [vmem:[#allocation3 + $0x6b8] sm:$0x3] }
  0x9f   : > { %v911_v48 = vsub.f32 %v1408_v12, %v901_v23  ;;  %v912_v49 = vsub.f32 %v1408_v12, %v902_v24  ;;  %v913_v50 = vsub.f32 %v1408_v12, %v903_v25  ;;  %v914_v51 = vsub.f32 %v1408_v12, %v904_v33 }
  0xa0   : > { %v915_v52 = vsub.f32 %v1408_v12, %v905_v34  ;;  %v916_v53 = vsub.f32 %v1408_v12, %v906_v36  ;;  %v917_v54 = vsub.f32 %v1408_v12, %v907_v44  ;;  %v894_v57 = vadd.f32 %v885_v32, %v855_v26 }
  0xa1   : > { %v918_v58 = vand.u32 2147483647, %v909_v40  ;;  %v919_v59 = vand.u32 2147483647, %v910_v47  ;;  %v920_v60 = vand.u32 2147483647, %v911_v48  ;;  %v895_v0 = vadd.f32 %v886_v41, %v856_v30 }
  0xa2   : > { %v921_v1 = vand.u32 2147483647, %v912_v49  ;;  %v922_v2 = vand.u32 2147483647, %v913_v50  ;;  %v923_v3 = vand.u32 2147483647, %v914_v51  ;;  %v896_v4 = vadd.f32 %v887_v42, %v857_v31 }
  0xa3   : > { %v924_v5 = vand.u32 2147483647, %v915_v52  ;;  %v948_v9 = vsub.f32 %v1207_v39, %v938_v55  ;;  %v949_v10 = vsub.f32 %v1207_v39, %v939_v56  ;;  %v925_v11 = vand.u32 2147483647, %v916_v53  ;;  %v1019_v49 = vld [vmem:[%s1553_s2 + $0x78] sm:$0xff] (%p34_p0)  ;;  %v1018_v50 = vld [vmem:[%s1553_s2 + $0x70] sm:$0xff] (%p34_p0) }
  0xa4   : > { %v926_v12 = vand.u32 2147483647, %v917_v54  ;;  %v927_v13 = vadd.f32 %v918_v58, %v888_v43  ;;  %v928_v14 = vadd.f32 %v919_v59, %v889_v35  ;;  %v929_v16 = vadd.f32 %v920_v60, %v890_v45  ;;  %1125 = vmatpush.msra.mxu2 (%p34_p0), %v1019_v49  ;;  %1126 = vmatpush.msra.mxu3 (%p34_p0), %v1019_v49  ;;  %v1016_v51 = vld [vmem:[%s1553_s2 + $0x60] sm:$0xff] (%p34_p0)  ;;  %v1015_v52 = vld [vmem:[%s1553_s2 + $0x58] sm:$0xff] (%p34_p0)  ;;  %v1014_v53 = vld [vmem:[%s1553_s2 + $0x50] sm:$0xff] (%p34_p0) }
  0xa5   : > { %v930_v17 = vadd.f32 %v921_v1, %v891_v46  ;;  %v931_v18 = vadd.f32 %v922_v2, %v892_v37  ;;  %v932_v19 = vadd.f32 %v923_v3, %v893_v38  ;;  %v950_v20 = vsub.f32 %v1207_v39, %v940_v61  ;;  %1020 = vmatpush.msra.mxu0 (%p34_p0), %v1019_v49  ;;  %v1013_v54 = vld [vmem:[%s1553_s2 + $0x48] sm:$0xff] (%p34_p0)  ;;  %v1012_v55 = vld [vmem:[%s1553_s2 + $0x40] sm:$0xff] (%p34_p0)  ;;  %v1011_v56 = vld [vmem:[%s1553_s2 + $0x38] sm:$0xff] (%p34_p0) }
  0xa6   : > { %v951_v21 = vsub.f32 %v1207_v39, %v941_v62  ;;  %v952_v22 = vsub.f32 %v1207_v39, %v942_v63  ;;  %v953_v23 = vsub.f32 %v1207_v39, %v943_v6  ;;  %v954_v24 = vsub.f32 %v1207_v39, %v944_v7  ;;  %1124 = vmatpush.msra.mxu1 (%p34_p0), %v1019_v49  ;;  %v1009_v58 = vld [vmem:[%s1553_s2 + $0x28] sm:$0xff] (%p34_p0)  ;;  %v1008_v59 = vld [vmem:[%s1553_s2 + $0x20] sm:$0xff] (%p34_p0)  ;;  %v1007_v60 = vld [vmem:[%s1553_s2 + $0x18] sm:$0xff] (%p34_p0) }
  0xa7   : > { %v955_v25 = vsub.f32 %v1207_v39, %v945_v8  ;;  %v956_v26 = vsub.f32 %v1207_v39, %v946_v15  ;;  %v957_v27 = vand.u32 2147483647, %v948_v9  ;;  %v933_v28 = vadd.f32 %v924_v5, %v894_v57  ;;  %v1017_v39 = vld [vmem:[%s1553_s2 + $0x68] sm:$0xff] (%p34_p0)  ;;  %1128 = vmatpush.msra.mxu2 (%p34_p0), %v1018_v50  ;;  %1129 = vmatpush.msra.mxu3 (%p34_p0), %v1018_v50  ;;  %v1010_v57 = vld [vmem:[%s1553_s2 + $0x30] sm:$0xff] (%p34_p0)  ;;  %v1004_v63 = vld [vmem:[%s1553_s2] sm:$0xff] (%p34_p0) }
  0xa8   : > { %v958_v29 = vand.u32 2147483647, %v949_v10  ;;  %v959_v30 = vand.u32 2147483647, %v950_v20  ;;  %v960_v31 = vand.u32 2147483647, %v951_v21  ;;  %v934_v40 = vadd.f32 %v925_v11, %v895_v0  ;;  %1021 = vmatpush.msra.mxu0 (%p34_p0), %v1018_v50  ;;  %1127 = vmatpush.msra.mxu1 (%p34_p0), %v1018_v50 }
  0xa9   : > { %v961_v32 = vand.u32 2147483647, %v952_v22  ;;  %v962_v33 = vand.u32 2147483647, %v953_v23  ;;  %v963_v34 = vand.u32 2147483647, %v954_v24  ;;  %v966_v36 = vadd.f32 %v957_v27, %v927_v13  ;;  %1131 = vmatpush.msra.mxu2 (%p34_p0), %v1017_v39  ;;  %1132 = vmatpush.msra.mxu3 (%p34_p0), %v1017_v39 }
  0xaa   : > { %v964_v41 = vand.u32 2147483647, %v955_v25  ;;  %v967_v42 = vadd.f32 %v958_v29, %v928_v14  ;;  %v968_v43 = vadd.f32 %v959_v30, %v929_v16  ;;  %v935_v35 = vadd.f32 %v926_v12, %v896_v4  ;;  %1022 = vmatpush.msra.mxu0 (%p34_p0), %v1017_v39  ;;  %1130 = vmatpush.msra.mxu1 (%p34_p0), %v1017_v39  ;;  %v1006_v61 = vld [vmem:[%s1553_s2 + $0x10] sm:$0xff] (%p34_p0)  ;;  %v1005_v62 = vld [vmem:[%s1553_s2 + $0x8] sm:$0xff] (%p34_p0) }
  0xab   : > { %v965_v44 = vand.u32 2147483647, %v956_v26  ;;  %v969_v45 = vadd.f32 %v960_v31, %v930_v17  ;;  %v970_v46 = vadd.f32 %v961_v32, %v931_v18  ;;  %977 = vst [vmem:[%s976_s24] sm:$0xff] %v966_v36  ;;  %v971_v37 = vadd.f32 %v962_v33, %v932_v19  ;;  %1134 = vmatpush.msra.mxu2 (%p34_p0), %v1016_v51 }
  0xac   : > { %978 = vst [vmem:[%s976_s24 + $0x8] sm:$0xff] %v967_v42  ;;  %v972_v38 = vadd.f32 %v963_v34, %v933_v28  ;;  %v973_v47 = vadd.f32 %v964_v41, %v934_v40  ;;  %1135 = vmatpush.msra.mxu3 (%p34_p0), %v1016_v51  ;;  %1023 = vmatpush.msra.mxu0 (%p34_p0), %v1016_v51 }
  0xad   : > { %979 = vst [vmem:[%s976_s24 + $0x10] sm:$0xff] %v968_v43  ;;  %v974_v48 = vadd.f32 %v965_v44, %v935_v35  ;;  %1133 = vmatpush.msra.mxu1 (%p34_p0), %v1016_v51  ;;  %1137 = vmatpush.msra.mxu2 (%p34_p0), %v1015_v52 }
  0xae   : > { %980 = vst [vmem:[%s976_s24 + $0x18] sm:$0xff] %v969_v45  ;;  %1138 = vmatpush.msra.mxu3 (%p34_p0), %v1015_v52  ;;  %1024 = vmatpush.msra.mxu0 (%p34_p0), %v1015_v52 }
  0xaf   : > { %981 = vst [vmem:[%s976_s24 + $0x20] sm:$0xff] %v970_v46  ;;  %36 = sbr.rel (!%p34_p0) target bundleno = 8 (0x8), region = 68  ;;  %1136 = vmatpush.msra.mxu1 (%p34_p0), %v1015_v52  ;;  %1140 = vmatpush.msra.mxu2 (%p34_p0), %v1014_v53 }
  0xb0   : > { %982 = vst [vmem:[%s976_s24 + $0x28] sm:$0xff] %v971_v37  ;;  %1141 = vmatpush.msra.mxu3 (%p34_p0), %v1014_v53  ;;  %1025 = vmatpush.msra.mxu0 (%p34_p0), %v1014_v53 }
  0xb1   : > { %983 = vst [vmem:[%s976_s24 + $0x30] sm:$0xff] %v972_v38  ;;  %1139 = vmatpush.msra.mxu1 (%p34_p0), %v1014_v53  ;;  %1143 = vmatpush.msra.mxu2 (%p34_p0), %v1013_v54 }
  0xb2   : > { %984 = vst [vmem:[%s976_s24 + $0x38] sm:$0xff] %v973_v47  ;;  %1144 = vmatpush.msra.mxu3 (%p34_p0), %v1013_v54  ;;  %1026 = vmatpush.msra.mxu0 (%p34_p0), %v1013_v54 }
  0xb3   : > { %985 = vst [vmem:[%s976_s24 + $0x40] sm:$0x3] %v974_v48  ;;  %1142 = vmatpush.msra.mxu1 (%p34_p0), %v1013_v54  ;;  %1146 = vmatpush.msra.mxu2 (%p34_p0), %v1012_v55 }
  0xb4   :  { %1147 = vmatpush.msra.mxu3 %v1012_v55  ;;  %1027 = vmatpush.msra.mxu0 %v1012_v55 }
  0xb5   :  { %1145 = vmatpush.msra.mxu1 %v1012_v55  ;;  %1149 = vmatpush.msra.mxu2 %v1011_v56 }
  0xb6   :  { %1150 = vmatpush.msra.mxu3 %v1011_v56  ;;  %1028 = vmatpush.msra.mxu0 %v1011_v56 }
  0xb7   :  { %1148 = vmatpush.msra.mxu1 %v1011_v56  ;;  %1152 = vmatpush.msra.mxu2 %v1010_v57 }
  0xb8   :  { %1153 = vmatpush.msra.mxu3 %v1010_v57  ;;  %1029 = vmatpush.msra.mxu0 %v1010_v57 }
  0xb9   :  { %1151 = vmatpush.msra.mxu1 %v1010_v57  ;;  %1155 = vmatpush.msra.mxu2 %v1009_v58 }
  0xba   :  { %1156 = vmatpush.msra.mxu3 %v1009_v58  ;;  %1030 = vmatpush.msra.mxu0 %v1009_v58  ;;  %v994_v0 = vld [vmem:[#allocation2 + $0x40] sm:$0xff]  ;;  %v999_v1 = vld [vmem:[#allocation2 + $0x68] sm:$0xff]  ;;  %v1000_v5 = vld [vmem:[#allocation2 + $0x70] sm:$0xff] }
  0xbb   :  { %1154 = vmatpush.msra.mxu1 %v1009_v58  ;;  %1158 = vmatpush.msra.mxu2 %v1008_v59  ;;  %v986_v2 = vld [vmem:[#allocation2] sm:$0xff]  ;;  %v995_v4 = vld [vmem:[#allocation2 + $0x48] sm:$0xff]  ;;  %v996_v8 = vld [vmem:[#allocation2 + $0x50] sm:$0xff] }
  0xbc   :  { %1159 = vmatpush.msra.mxu3 %v1008_v59  ;;  %1031 = vmatpush.msra.mxu0 %v1008_v59  ;;  %v990_v3 = vld [vmem:[#allocation2 + $0x20] sm:$0xff]  ;;  %v987_v6 = vld [vmem:[#allocation2 + $0x8] sm:$0xff]  ;;  %v1001_v9 = vld [vmem:[#allocation2 + $0x78] sm:$0xff] }
  0xbd   :  { %1157 = vmatpush.msra.mxu1 %v1008_v59  ;;  %1161 = vmatpush.msra.mxu2 %v1007_v60  ;;  %v991_v7 = vld [vmem:[#allocation2 + $0x28] sm:$0xff]  ;;  %v988_v10 = vld [vmem:[#allocation2 + $0x10] sm:$0xff]  ;;  %v997_v12 = vld [vmem:[#allocation2 + $0x58] sm:$0xff] }
  0xbe   :  { %1162 = vmatpush.msra.mxu3 %v1007_v60  ;;  %1032 = vmatpush.msra.mxu0 %v1007_v60  ;;  %v992_v11 = vld [vmem:[#allocation2 + $0x30] sm:$0xff]  ;;  %v1002_v13 = vld [vmem:[#allocation2 + $0x80] sm:$0xff]  ;;  %v989_v14 = vld [vmem:[#allocation2 + $0x18] sm:$0xff] }
  0xbf   :  { %1160 = vmatpush.msra.mxu1 %v1007_v60  ;;  %1164 = vmatpush.msra.mxu2 %v1006_v61  ;;  %v993_v15 = vld [vmem:[#allocation2 + $0x38] sm:$0xff]  ;;  %v998_v16 = vld [vmem:[#allocation2 + $0x60] sm:$0xff]  ;;  %v1003_v17 = vld [vmem:[#allocation2 + $0x88] sm:$0xff] }
  0xc0   :  { %1165 = vmatpush.msra.mxu3 %v1006_v61  ;;  %1033 = vmatpush.msra.mxu0 %v1006_v61 }
  0xc1   :  { %1163 = vmatpush.msra.mxu1 %v1006_v61  ;;  %1167 = vmatpush.msra.mxu2 %v1005_v62 }
  0xc2   :  { %1168 = vmatpush.msra.mxu3 %v1005_v62  ;;  %1034 = vmatpush.msra.mxu0 %v1005_v62 }
  0xc3   :  { %1166 = vmatpush.msra.mxu1 %v1005_v62  ;;  %1170 = vmatpush.msra.mxu2 %v1004_v63 }
  0xc4   :  { %1171 = vmatpush.msra.mxu3 %v1004_v63  ;;  %1060 = vmatmul.f32.vlgmr.msra.gmra.mxu2 %v994_v0 }
  0xc5   :  { %1075 = vmatmul.f32.vlgmr.msra.gmra.mxu3 %v999_v1  ;;  %1035 = vmatpush.msra.mxu0 %v1004_v63 }
  0xc6   :  { %1169 = vmatpush.msra.mxu1 %v1004_v63  ;;  %1036 = vmatmul.f32.vlgmr.msra.gmra.mxu0 %v986_v2 }
  0xc7   :  { %1048 = vmatmul.f32.vlgmr.msra.gmra.mxu1 %v990_v3 }
  0xcc   :  { %1063 = vmatmul.f32.gmra.mxu2 %v995_v4 }
  0xcd   :  { %1078 = vmatmul.f32.gmra.mxu3 %v1000_v5 }
  0xce   :  { %1039 = vmatmul.f32.gmra.mxu0 %v987_v6 }
  0xcf   :  { %1051 = vmatmul.f32.gmra.mxu1 %v991_v7 }
  0xd4   :  { %1066 = vmatmul.f32.gmra.mxu2 %v996_v8 }
  0xd5   :  { %1081 = vmatmul.f32.gmra.mxu3 %v1001_v9 }
  0xd6   :  { %1042 = vmatmul.f32.gmra.mxu0 %v988_v10 }
  0xd7   :  { %1054 = vmatmul.f32.gmra.mxu1 %v992_v11 }
  0xdc   :  { %1069 = vmatmul.f32.gmra.mxu2 %v997_v12 }
  0xdd   :  { %1084 = vmatmul.f32.gmra.mxu3 %v1002_v13 }
  0xde   :  { %1045 = vmatmul.f32.gmra.mxu0 %v989_v14 }
  0xdf   :  { %1057 = vmatmul.f32.gmra.mxu1 %v993_v15 }
  0xe4   :  { %1072 = vmatmul.f32.gmra.mxu2 %v998_v16 }
  0xe5   :  { %1087 = vmatmul.f32.gmra.mxu3 %v1003_v17 }
 0x143   :  { %v1037_v18 = vpop.f32.mrf.mxu0 }
 0x144   :  { %v1049_v19 = vpop.f32.mrf.mxu1  ;;  %1092 = vst.msk [vmem:[%s1554_s3] sm:$0xff] %vm1091_vm0, %v1037_v18 }
 0x145   :  { %1096 = vst.msk [vmem:[%s1554_s3 + $0x20] sm:$0xff] %vm1091_vm0, %v1049_v19 }
 0x147   :  { %v1061_v20 = vpop.f32.mrf.mxu2 }
 0x148   :  { %v1076_v21 = vpop.f32.mrf.mxu3  ;;  %1100 = vst.msk [vmem:[%s1554_s3 + $0x40] sm:$0xff] %vm1091_vm0, %v1061_v20 }
 0x149   :  { %1105 = vst.msk [vmem:[%s1554_s3 + $0x68] sm:$0xff] %vm1091_vm0, %v1076_v21 }
 0x14b   :  { %v1040_v22 = vpop.f32.mrf.mxu0 }
 0x14c   :  { %v1052_v23 = vpop.f32.mrf.mxu1  ;;  %1093 = vst.msk [vmem:[%s1554_s3 + $0x8] sm:$0xff] %vm1091_vm0, %v1040_v22 }
 0x14d   :  { %1097 = vst.msk [vmem:[%s1554_s3 + $0x28] sm:$0xff] %vm1091_vm0, %v1052_v23 }
 0x14f   :  { %v1064_v24 = vpop.f32.mrf.mxu2 }
 0x150   :  { %v1079_v25 = vpop.f32.mrf.mxu3  ;;  %1101 = vst.msk [vmem:[%s1554_s3 + $0x48] sm:$0xff] %vm1091_vm0, %v1064_v24 }
 0x151   :  { %1106 = vst.msk [vmem:[%s1554_s3 + $0x70] sm:$0xff] %vm1091_vm0, %v1079_v25 }
 0x153   :  { %v1043_v26 = vpop.f32.mrf.mxu0 }
 0x154   :  { %v1055_v27 = vpop.f32.mrf.mxu1  ;;  %1094 = vst.msk [vmem:[%s1554_s3 + $0x10] sm:$0xff] %vm1091_vm0, %v1043_v26 }
 0x155   :  { %1098 = vst.msk [vmem:[%s1554_s3 + $0x30] sm:$0xff] %vm1091_vm0, %v1055_v27 }
 0x157   :  { %v1067_v28 = vpop.f32.mrf.mxu2 }
 0x158   :  { %v1082_v29 = vpop.f32.mrf.mxu3  ;;  %1102 = vst.msk [vmem:[%s1554_s3 + $0x50] sm:$0xff] %vm1091_vm0, %v1067_v28 }
 0x159   :  { %1107 = vst.msk [vmem:[%s1554_s3 + $0x78] sm:$0xff] %vm1091_vm0, %v1082_v29 }
 0x15b   :  { %v1046_v30 = vpop.f32.mrf.mxu0 }
 0x15c   :  { %v1058_v31 = vpop.f32.mrf.mxu1  ;;  %1095 = vst.msk [vmem:[%s1554_s3 + $0x18] sm:$0xff] %vm1091_vm0, %v1046_v30 }
 0x15d   :  { %1099 = vst.msk [vmem:[%s1554_s3 + $0x38] sm:$0xff] %vm1091_vm0, %v1058_v31 }
 0x15f   :  { %v1070_v32 = vpop.f32.mrf.mxu2 }
 0x160   :  { %v1085_v33 = vpop.f32.mrf.mxu3  ;;  %1103 = vst.msk [vmem:[%s1554_s3 + $0x58] sm:$0xff] %vm1091_vm0, %v1070_v32 }
 0x161   :  { %1108 = vst.msk [vmem:[%s1554_s3 + $0x80] sm:$0xff] %vm1091_vm0, %v1085_v33 }
 0x167   :  { %v1073_v34 = vpop.f32.mrf.mxu2 }
 0x168   :  { %v1088_v36 = vpop.f32.mrf.mxu3  ;;  %1104 = vst.msk [vmem:[%s1554_s3 + $0x60] sm:$0xff] %vm1091_vm0, %v1073_v34 }
 0x169   :  { %1109 = vst.msk [vmem:[%s1554_s3 + $0x88] sm:$0xff] %vm1091_vm0, %v1088_v36 }
 0x16a   :  { %1114 = vsyncpa [#allocation4], 1 }

</bundles_post_ra>
